<compile_context>
chip_gen: v7x
topology: tpu7x:2x2x1
jax: 0.10.0
libtpu: 0.0.40
codegen_flags: <defaults>
</compile_context>

<pallas_src>
import math

import jax
import jax.numpy as jnp
from jax.experimental import pallas as pl
from jax.experimental.pallas import tpu as pltpu

# ----------------------------- config ---------------------------------------
BATCH = 2
SEQ = 8
HIDDEN = 32
NUM_HEADS = 2
HEAD_DIM = HIDDEN // NUM_HEADS
FFN = 64
NUM_LAYERS = 2
VOCAB = 64
NUM_LABELS = 2
LN_EPS = 1e-5
TOKENS = BATCH * SEQ
LOGIT_PAD = 128          # lane-dense logits slab; sliced to NUM_LABELS outside


# ------------------------------ helpers --------------------------------------
def _layernorm(x, gamma, beta):
    mu = jnp.mean(x, axis=-1, keepdims=True)
    var = jnp.mean((x - mu) ** 2, axis=-1, keepdims=True)
    return (x - mu) * jax.lax.rsqrt(var + LN_EPS) * gamma + beta


def _mm(a, w_bf16):
    """bf16 MXU matmul with f32 accumulation."""
    return jnp.dot(a.astype(jnp.bfloat16), w_bf16,
                   preferred_element_type=jnp.float32)


# ------------------------------ fused kernel ---------------------------------
def fused_forward_kernel(emb_ref, mask_ref, emb_g_ref, emb_b_ref,
                         wq_ref, bq_ref, wk_ref, bk_ref, wv_ref, bv_ref,
                         wo_ref, bo_ref, ln1g_ref, ln1b_ref,
                         w1_ref, b1_ref, w2_ref, b2_ref, ln2g_ref, ln2b_ref,
                         wh_ref, bh_ref, wc_ref, bc_ref,
                         out_ref):
    # emb:  (T, H) f32 token embeddings (word + pos), T = B*S
    # mask: (B, 1, S) additive bias (0 keep / -1e9 masked keys)
    x = _layernorm(emb_ref[...], emb_g_ref[...], emb_b_ref[...])    # (T, H) f32
    mask_bias = mask_ref[...]

    for l in range(NUM_LAYERS):                 # static unroll (NUM_LAYERS small)
        xb = x.astype(jnp.bfloat16)
        attn = jnp.zeros_like(x)
        for h in range(NUM_HEADS):              # per-head weights -> no lane slicing
            qh = (jnp.dot(xb, wq_ref[l, h], preferred_element_type=jnp.float32)
                  + bq_ref[l, h]).reshape(BATCH, SEQ, HEAD_DIM)
            kh = (jnp.dot(xb, wk_ref[l, h], preferred_element_type=jnp.float32)
                  + bk_ref[l, h]).reshape(BATCH, SEQ, HEAD_DIM)
            vh = (jnp.dot(xb, wv_ref[l, h], preferred_element_type=jnp.float32)
                  + bv_ref[l, h]).reshape(BATCH, SEQ, HEAD_DIM)

            # scores (1/sqrt(Hd) already folded into wq/bq)
            s = jnp.einsum("bqd,bkd->bqk",
                           qh.astype(jnp.bfloat16), kh.astype(jnp.bfloat16),
                           preferred_element_type=jnp.float32)
            s = s + mask_bias                               # broadcast over query axis
            m = jnp.max(s, axis=-1, keepdims=True)
            p = jnp.exp(s - m)
            p = p * pl.reciprocal(jnp.sum(p, axis=-1, keepdims=True), approx=True)

            ctx = jnp.einsum("bqk,bkd->bqd",
                             p.astype(jnp.bfloat16), vh.astype(jnp.bfloat16),
                             preferred_element_type=jnp.float32)
            # per-head output projection, accumulated (replaces concat + big matmul)
            attn = attn + jnp.dot(ctx.reshape(TOKENS, HEAD_DIM).astype(jnp.bfloat16),
                                  wo_ref[l, h], preferred_element_type=jnp.float32)

        attn = attn + bo_ref[l]
        x1 = _layernorm(x + attn, ln1g_ref[l], ln1b_ref[l])

        ff = _mm(x1, w1_ref[l]) + b1_ref[l]
        ff = jax.nn.gelu(ff, approximate=True)  # TODO(synk): HF roberta uses exact erf-GELU
        ff = _mm(ff, w2_ref[l]) + b2_ref[l]
        x = _layernorm(x1 + ff, ln2g_ref[l], ln2b_ref[l])

    # mean-pool over sequence, hidden linear, (dropout=identity), relu, classifier
    pooled = jnp.mean(x.reshape(BATCH, SEQ, HIDDEN), axis=1)        # (B, H)
    hcls = _mm(pooled, wh_ref[...]) + bh_ref[...]
    hcls = jnp.maximum(hcls, 0.0)
    out_ref[...] = _mm(hcls, wc_ref[...]) + bc_ref[...]             # (B, 128) lane-dense


# ---------------------------- parameter init ---------------------------------
def xavier_uniform(key, shape):
    fan_in, fan_out = shape[0], shape[1]
    bound = math.sqrt(6.0 / (fan_in + fan_out))
    return jax.random.uniform(key, shape, jnp.float32, -bound, bound)


def init_params(key):
    p = {}
    keys = iter(jax.random.split(key, 64))
    p["word_emb"] = jax.random.normal(next(keys), (VOCAB, HIDDEN), jnp.float32) * 0.02
    p["pos_emb"] = jax.random.normal(next(keys), (SEQ, HIDDEN), jnp.float32) * 0.02
    p["emb_ln_g"] = jnp.ones((1, HIDDEN), jnp.float32)
    p["emb_ln_b"] = jnp.zeros((1, HIDDEN), jnp.float32)

    layers = []
    for _ in range(NUM_LAYERS):
        lp = {}
        for name in ("wq", "wk", "wv", "wo"):
            lp[name] = jax.random.normal(next(keys), (HIDDEN, HIDDEN), jnp.float32) * 0.02
        for name in ("bq", "bk", "bv", "bo"):
            lp[name] = jnp.zeros((1, HIDDEN), jnp.float32)
        lp["ln1_g"] = jnp.ones((1, HIDDEN), jnp.float32)
        lp["ln1_b"] = jnp.zeros((1, HIDDEN), jnp.float32)
        lp["w1"] = jax.random.normal(next(keys), (HIDDEN, FFN), jnp.float32) * 0.02
        lp["b1"] = jnp.zeros((1, FFN), jnp.float32)
        lp["w2"] = jax.random.normal(next(keys), (FFN, HIDDEN), jnp.float32) * 0.02
        lp["b2"] = jnp.zeros((1, HIDDEN), jnp.float32)
        lp["ln2_g"] = jnp.ones((1, HIDDEN), jnp.float32)
        lp["ln2_b"] = jnp.zeros((1, HIDDEN), jnp.float32)
        layers.append(lp)
    p["layers"] = layers

    # classifier head (xavier-uniform weights, zero bias) — matches module init
    p["wh"] = xavier_uniform(next(keys), (HIDDEN, HIDDEN))
    p["bh"] = jnp.zeros((1, HIDDEN), jnp.float32)
    p["wc"] = xavier_uniform(next(keys), (HIDDEN, NUM_LABELS))
    p["bc"] = jnp.zeros((1, NUM_LABELS), jnp.float32)
    return p


def pack_params(p):
    """Stack per-layer weights on a leading layer axis, pre-split heads,
    fold the 1/sqrt(Hd) scale into Q, cast matmul weights to bf16 and pad the
    classifier output to a lane-dense width."""
    scale = 1.0 / math.sqrt(HEAD_DIM)
    bf16 = jnp.bfloat16

    def stack(name):
        return jnp.stack([lp[name] for lp in p["layers"]])

    def split_out_heads(w):        # (L, H, NH*Hd) -> (L, NH, H, Hd)
        return w.reshape(NUM_LAYERS, HIDDEN, NUM_HEADS, HEAD_DIM).transpose(0, 2, 1, 3)

    def split_out_heads_bias(b):   # (L, 1, NH*Hd) -> (L, NH, 1, Hd)
        return b.reshape(NUM_LAYERS, 1, NUM_HEADS, HEAD_DIM).transpose(0, 2, 1, 3)

    def split_in_heads(w):         # (L, NH*Hd, H) -> (L, NH, Hd, H)
        return w.reshape(NUM_LAYERS, NUM_HEADS, HEAD_DIM, HIDDEN)

    wc_pad = jnp.zeros((HIDDEN, LOGIT_PAD), jnp.float32).at[:, :NUM_LABELS].set(p["wc"])
    bc_pad = jnp.zeros((1, LOGIT_PAD), jnp.float32).at[:, :NUM_LABELS].set(p["bc"])

    return dict(
        word_emb=p["word_emb"], pos_emb=p["pos_emb"],
        emb_ln_g=p["emb_ln_g"], emb_ln_b=p["emb_ln_b"],
        wq=(split_out_heads(stack("wq")) * scale).astype(bf16),
        bq=split_out_heads_bias(stack("bq")) * scale,
        wk=split_out_heads(stack("wk")).astype(bf16),
        bk=split_out_heads_bias(stack("bk")),
        wv=split_out_heads(stack("wv")).astype(bf16),
        bv=split_out_heads_bias(stack("bv")),
        wo=split_in_heads(stack("wo")).astype(bf16),
        bo=stack("bo"),
        ln1_g=stack("ln1_g"), ln1_b=stack("ln1_b"),
        w1=stack("w1").astype(bf16), b1=stack("b1"),
        w2=stack("w2").astype(bf16), b2=stack("b2"),
        ln2_g=stack("ln2_g"), ln2_b=stack("ln2_b"),
        wh=p["wh"].astype(bf16), bh=p["bh"],
        wc=wc_pad.astype(bf16), bc=bc_pad,
    )


# ------------------------------ forward --------------------------------------
@jax.jit
def roberta_classifier_forward(packed, input_ids, attention_mask):
    # embedding gather is JAX glue; everything else runs in one Pallas kernel.
    positions = jnp.arange(SEQ, dtype=jnp.int32)
    emb = packed["word_emb"][input_ids] + packed["pos_emb"][positions][None]
    emb2d = emb.reshape(TOKENS, HIDDEN)

    # additive attention-mask bias: (B, 1, S), 0 for keep, -1e9 for masked keys
    mask_bias = (1.0 - attention_mask.astype(jnp.float32))[:, None, :] * -1e9

    args = (emb2d, mask_bias, packed["emb_ln_g"], packed["emb_ln_b"],
            packed["wq"], packed["bq"], packed["wk"], packed["bk"],
            packed["wv"], packed["bv"], packed["wo"], packed["bo"],
            packed["ln1_g"], packed["ln1_b"],
            packed["w1"], packed["b1"], packed["w2"], packed["b2"],
            packed["ln2_g"], packed["ln2_b"],
            packed["wh"], packed["bh"], packed["wc"], packed["bc"])

    logits_padded = pl.pallas_call(
        fused_forward_kernel,
        out_shape=jax.ShapeDtypeStruct((BATCH, LOGIT_PAD), jnp.float32),
        in_specs=[pl.BlockSpec(memory_space=pltpu.MemorySpace.VMEM)] * len(args),
        out_specs=pl.BlockSpec(memory_space=pltpu.MemorySpace.VMEM),
    )(*args)
    return logits_padded[:, :NUM_LABELS]


# -------------------------------- main ----------------------------------------
if __name__ == "__main__":
    key = jax.random.PRNGKey(0)
    k_param, k_ids = jax.random.split(key)

    params = init_params(k_param)
    packed = pack_params(params)

    input_ids = jax.random.randint(k_ids, (BATCH, SEQ), 0, VOCAB, dtype=jnp.int32)
    attention_mask = jnp.array(
        [[1, 1, 1, 1, 1, 1, 1, 1],
         [1, 1, 1, 1, 1, 0, 0, 0]], dtype=jnp.int32)

    logits = roberta_classifier_forward(packed, input_ids, attention_mask)
    jax.block_until_ready(logits)
    assert logits.shape == (BATCH, NUM_LABELS)
    assert bool(jnp.all(jnp.isfinite(logits)))
    print("KERNEL_OK")
</pallas_src>

<mosaic_0001>
module attributes {stable_mosaic.version = 11 : i64} {
  func.func @fused_forward_kernel(%arg0: memref<16x32xf32, #tpu.memory_space<vmem>>, %arg1: memref<2x1x8xf32, #tpu.memory_space<vmem>>, %arg2: memref<1x32xf32, #tpu.memory_space<vmem>>, %arg3: memref<1x32xf32, #tpu.memory_space<vmem>>, %arg4: memref<2x2x32x16xbf16, #tpu.memory_space<vmem>>, %arg5: memref<2x2x1x16xf32, #tpu.memory_space<vmem>>, %arg6: memref<2x2x32x16xbf16, #tpu.memory_space<vmem>>, %arg7: memref<2x2x1x16xf32, #tpu.memory_space<vmem>>, %arg8: memref<2x2x32x16xbf16, #tpu.memory_space<vmem>>, %arg9: memref<2x2x1x16xf32, #tpu.memory_space<vmem>>, %arg10: memref<2x2x16x32xbf16, #tpu.memory_space<vmem>>, %arg11: memref<2x1x32xf32, #tpu.memory_space<vmem>>, %arg12: memref<2x1x32xf32, #tpu.memory_space<vmem>>, %arg13: memref<2x1x32xf32, #tpu.memory_space<vmem>>, %arg14: memref<2x32x64xbf16, #tpu.memory_space<vmem>>, %arg15: memref<2x1x64xf32, #tpu.memory_space<vmem>>, %arg16: memref<2x64x32xbf16, #tpu.memory_space<vmem>>, %arg17: memref<2x1x32xf32, #tpu.memory_space<vmem>>, %arg18: memref<2x1x32xf32, #tpu.memory_space<vmem>>, %arg19: memref<2x1x32xf32, #tpu.memory_space<vmem>>, %arg20: memref<32x32xbf16, #tpu.memory_space<vmem>>, %arg21: memref<1x32xf32, #tpu.memory_space<vmem>>, %arg22: memref<32x128xbf16, #tpu.memory_space<vmem>>, %arg23: memref<1x128xf32, #tpu.memory_space<vmem>>, %arg24: memref<2x128xf32, #tpu.memory_space<vmem>>) attributes {dimension_semantics = [], scalar_prefetch = 0 : i64, scratch_operands = 0 : i64, tpu.core_type = #tpu.core_type<tc>} {
    %c0 = arith.constant 0 : index
    %c0_0 = arith.constant 0 : index
    %0 = vector.load %arg0[%c0, %c0_0] : memref<16x32xf32, #tpu.memory_space<vmem>>, vector<16x32xf32>
    %c0_1 = arith.constant 0 : index
    %c0_2 = arith.constant 0 : index
    %1 = vector.load %arg2[%c0_1, %c0_2] : memref<1x32xf32, #tpu.memory_space<vmem>>, vector<1x32xf32>
    %c0_3 = arith.constant 0 : index
    %c0_4 = arith.constant 0 : index
    %2 = vector.load %arg3[%c0_3, %c0_4] : memref<1x32xf32, #tpu.memory_space<vmem>>, vector<1x32xf32>
    %cst = arith.constant dense<0.000000e+00> : vector<16xf32>
    %3 = vector.multi_reduction <add>, %0, %cst [1] : vector<16x32xf32> to vector<16xf32>
    %4 = vector.shape_cast %3 : vector<16xf32> to vector<16x1xf32>
    %cst_5 = arith.constant 3.200000e+01 : f32
    %5 = vector.broadcast %cst_5 : f32 to vector<16x1xf32>
    %6 = arith.divf %4, %5 : vector<16x1xf32>
    %7 = vector.broadcast %6 : vector<16x1xf32> to vector<16x32xf32>
    %8 = arith.subf %0, %7 : vector<16x32xf32>
    %9 = arith.mulf %8, %8 : vector<16x32xf32>
    %cst_6 = arith.constant dense<0.000000e+00> : vector<16xf32>
    %10 = vector.multi_reduction <add>, %9, %cst_6 [1] : vector<16x32xf32> to vector<16xf32>
    %11 = vector.shape_cast %10 : vector<16xf32> to vector<16x1xf32>
    %cst_7 = arith.constant 3.200000e+01 : f32
    %12 = vector.broadcast %cst_7 : f32 to vector<16x1xf32>
    %13 = arith.divf %11, %12 : vector<16x1xf32>
    %14 = vector.broadcast %6 : vector<16x1xf32> to vector<16x32xf32>
    %15 = arith.subf %0, %14 : vector<16x32xf32>
    %cst_8 = arith.constant 9.99999974E-6 : f32
    %16 = vector.broadcast %cst_8 : f32 to vector<16x1xf32>
    %17 = arith.addf %13, %16 : vector<16x1xf32>
    %18 = math.rsqrt %17 : vector<16x1xf32>
    %19 = vector.broadcast %18 : vector<16x1xf32> to vector<16x32xf32>
    %20 = arith.mulf %15, %19 : vector<16x32xf32>
    %21 = vector.broadcast %1 : vector<1x32xf32> to vector<16x32xf32>
    %22 = arith.mulf %20, %21 : vector<16x32xf32>
    %23 = vector.broadcast %2 : vector<1x32xf32> to vector<16x32xf32>
    %24 = arith.addf %22, %23 : vector<16x32xf32>
    %c0_9 = arith.constant 0 : index
    %c0_10 = arith.constant 0 : index
    %c0_11 = arith.constant 0 : index
    %25 = vector.load %arg1[%c0_9, %c0_10, %c0_11] : memref<2x1x8xf32, #tpu.memory_space<vmem>>, vector<2x1x8xf32>
    %26 = arith.truncf %24 : vector<16x32xf32> to vector<16x32xbf16>
    %cst_12 = arith.constant 0.000000e+00 : f32
    %27 = vector.broadcast %cst_12 : f32 to vector<16x32xf32>
    %c0_13 = arith.constant 0 : index
    %c0_14 = arith.constant 0 : index
    %c0_15 = arith.constant 0 : index
    %c0_16 = arith.constant 0 : index
    %28 = vector.load %arg4[%c0_13, %c0_14, %c0_15, %c0_16] : memref<2x2x32x16xbf16, #tpu.memory_space<vmem>>, vector<1x1x32x16xbf16>
    %29 = vector.shape_cast %28 : vector<1x1x32x16xbf16> to vector<32x16xbf16>
    %cst_17 = arith.constant dense<0.000000e+00> : vector<16x16xf32>
    %30 = tpu.matmul %26, %29, %cst_17 {dimension_numbers = #tpu.dot_dimension_numbers<[1], [0], [0], [1], [0, 0, 1, 1], [], []>} : vector<16x32xbf16>, vector<32x16xbf16>, vector<16x16xf32> -> vector<16x16xf32>
    %c0_18 = arith.constant 0 : index
    %c0_19 = arith.constant 0 : index
    %c0_20 = arith.constant 0 : index
    %c0_21 = arith.constant 0 : index
    %31 = vector.load %arg5[%c0_18, %c0_19, %c0_20, %c0_21] : memref<2x2x1x16xf32, #tpu.memory_space<vmem>>, vector<1x1x1x16xf32>
    %32 = vector.shape_cast %31 : vector<1x1x1x16xf32> to vector<1x16xf32>
    %33 = vector.broadcast %32 : vector<1x16xf32> to vector<16x16xf32>
    %34 = arith.addf %30, %33 : vector<16x16xf32>
    %35 = vector.shape_cast %34 : vector<16x16xf32> to vector<2x8x16xf32>
    %c0_22 = arith.constant 0 : index
    %c0_23 = arith.constant 0 : index
    %c0_24 = arith.constant 0 : index
    %c0_25 = arith.constant 0 : index
    %36 = vector.load %arg6[%c0_22, %c0_23, %c0_24, %c0_25] : memref<2x2x32x16xbf16, #tpu.memory_space<vmem>>, vector<1x1x32x16xbf16>
    %37 = vector.shape_cast %36 : vector<1x1x32x16xbf16> to vector<32x16xbf16>
    %cst_26 = arith.constant dense<0.000000e+00> : vector<16x16xf32>
    %38 = tpu.matmul %26, %37, %cst_26 {dimension_numbers = #tpu.dot_dimension_numbers<[1], [0], [0], [1], [0, 0, 1, 1], [], []>} : vector<16x32xbf16>, vector<32x16xbf16>, vector<16x16xf32> -> vector<16x16xf32>
    %c0_27 = arith.constant 0 : index
    %c0_28 = arith.constant 0 : index
    %c0_29 = arith.constant 0 : index
    %c0_30 = arith.constant 0 : index
    %39 = vector.load %arg7[%c0_27, %c0_28, %c0_29, %c0_30] : memref<2x2x1x16xf32, #tpu.memory_space<vmem>>, vector<1x1x1x16xf32>
    %40 = vector.shape_cast %39 : vector<1x1x1x16xf32> to vector<1x16xf32>
    %41 = vector.broadcast %40 : vector<1x16xf32> to vector<16x16xf32>
    %42 = arith.addf %38, %41 : vector<16x16xf32>
    %43 = vector.shape_cast %42 : vector<16x16xf32> to vector<2x8x16xf32>
    %c0_31 = arith.constant 0 : index
    %c0_32 = arith.constant 0 : index
    %c0_33 = arith.constant 0 : index
    %c0_34 = arith.constant 0 : index
    %44 = vector.load %arg8[%c0_31, %c0_32, %c0_33, %c0_34] : memref<2x2x32x16xbf16, #tpu.memory_space<vmem>>, vector<1x1x32x16xbf16>
    %45 = vector.shape_cast %44 : vector<1x1x32x16xbf16> to vector<32x16xbf16>
    %cst_35 = arith.constant dense<0.000000e+00> : vector<16x16xf32>
    %46 = tpu.matmul %26, %45, %cst_35 {dimension_numbers = #tpu.dot_dimension_numbers<[1], [0], [0], [1], [0, 0, 1, 1], [], []>} : vector<16x32xbf16>, vector<32x16xbf16>, vector<16x16xf32> -> vector<16x16xf32>
    %c0_36 = arith.constant 0 : index
    %c0_37 = arith.constant 0 : index
    %c0_38 = arith.constant 0 : index
    %c0_39 = arith.constant 0 : index
    %47 = vector.load %arg9[%c0_36, %c0_37, %c0_38, %c0_39] : memref<2x2x1x16xf32, #tpu.memory_space<vmem>>, vector<1x1x1x16xf32>
    %48 = vector.shape_cast %47 : vector<1x1x1x16xf32> to vector<1x16xf32>
    %49 = vector.broadcast %48 : vector<1x16xf32> to vector<16x16xf32>
    %50 = arith.addf %46, %49 : vector<16x16xf32>
    %51 = vector.shape_cast %50 : vector<16x16xf32> to vector<2x8x16xf32>
    %52 = arith.truncf %35 : vector<2x8x16xf32> to vector<2x8x16xbf16>
    %53 = arith.truncf %43 : vector<2x8x16xf32> to vector<2x8x16xbf16>
    "tpu.trace_start"() <{level = 10 : i32, message = "bqd,bkd->bqk"}> : () -> ()
    %cst_40 = arith.constant dense<0.000000e+00> : vector<2x8x8xf32>
    %54 = tpu.matmul %52, %53, %cst_40 {dimension_numbers = #tpu.dot_dimension_numbers<[2], [2], [1], [1], [0, 0, 0, 1, 1, 1], [0], [0]>} : vector<2x8x16xbf16>, vector<2x8x16xbf16>, vector<2x8x8xf32> -> vector<2x8x8xf32>
    "tpu.trace_stop"() : () -> ()
    %55 = vector.broadcast %25 : vector<2x1x8xf32> to vector<2x8x8xf32>
    %56 = arith.addf %54, %55 : vector<2x8x8xf32>
    %cst_41 = arith.constant dense<0xFF800000> : vector<2x8xf32>
    %57 = vector.multi_reduction <maximumf>, %56, %cst_41 [2] : vector<2x8x8xf32> to vector<2x8xf32>
    %58 = vector.shape_cast %57 : vector<2x8xf32> to vector<2x8x1xf32>
    %59 = vector.broadcast %58 : vector<2x8x1xf32> to vector<2x8x8xf32>
    %60 = arith.subf %56, %59 : vector<2x8x8xf32>
    %61 = math.exp %60 : vector<2x8x8xf32>
    %cst_42 = arith.constant dense<0.000000e+00> : vector<2x8xf32>
    %62 = vector.multi_reduction <add>, %61, %cst_42 [2] : vector<2x8x8xf32> to vector<2x8xf32>
    %63 = vector.shape_cast %62 : vector<2x8xf32> to vector<2x8x1xf32>
    %64 = tpu.reciprocal %63 {approx = true} : vector<2x8x1xf32> -> vector<2x8x1xf32>
    %65 = vector.broadcast %64 : vector<2x8x1xf32> to vector<2x8x8xf32>
    %66 = arith.mulf %61, %65 : vector<2x8x8xf32>
    %67 = arith.truncf %66 : vector<2x8x8xf32> to vector<2x8x8xbf16>
    %68 = arith.truncf %51 : vector<2x8x16xf32> to vector<2x8x16xbf16>
    "tpu.trace_start"() <{level = 10 : i32, message = "bqk,bkd->bqd"}> : () -> ()
    %cst_43 = arith.constant dense<0.000000e+00> : vector<2x8x16xf32>
    %69 = tpu.matmul %67, %68, %cst_43 {dimension_numbers = #tpu.dot_dimension_numbers<[2], [1], [1], [2], [0, 0, 0, 1, 1, 2], [0], [0]>} : vector<2x8x8xbf16>, vector<2x8x16xbf16>, vector<2x8x16xf32> -> vector<2x8x16xf32>
    "tpu.trace_stop"() : () -> ()
    %70 = vector.shape_cast %69 : vector<2x8x16xf32> to vector<16x16xf32>
    %71 = arith.truncf %70 : vector<16x16xf32> to vector<16x16xbf16>
    %c0_44 = arith.constant 0 : index
    %c0_45 = arith.constant 0 : index
    %c0_46 = arith.constant 0 : index
    %c0_47 = arith.constant 0 : index
    %72 = vector.load %arg10[%c0_44, %c0_45, %c0_46, %c0_47] : memref<2x2x16x32xbf16, #tpu.memory_space<vmem>>, vector<1x1x16x32xbf16>
    %73 = vector.shape_cast %72 : vector<1x1x16x32xbf16> to vector<16x32xbf16>
    %cst_48 = arith.constant dense<0.000000e+00> : vector<16x32xf32>
    %74 = tpu.matmul %71, %73, %cst_48 {dimension_numbers = #tpu.dot_dimension_numbers<[1], [0], [0], [1], [0, 0, 1, 1], [], []>} : vector<16x16xbf16>, vector<16x32xbf16>, vector<16x32xf32> -> vector<16x32xf32>
    %75 = arith.addf %27, %74 : vector<16x32xf32>
    %c0_49 = arith.constant 0 : index
    %c1 = arith.constant 1 : index
    %c0_50 = arith.constant 0 : index
    %c0_51 = arith.constant 0 : index
    %76 = vector.load %arg4[%c0_49, %c1, %c0_50, %c0_51] : memref<2x2x32x16xbf16, #tpu.memory_space<vmem>>, vector<1x1x32x16xbf16>
    %77 = vector.shape_cast %76 : vector<1x1x32x16xbf16> to vector<32x16xbf16>
    %cst_52 = arith.constant dense<0.000000e+00> : vector<16x16xf32>
    %78 = tpu.matmul %26, %77, %cst_52 {dimension_numbers = #tpu.dot_dimension_numbers<[1], [0], [0], [1], [0, 0, 1, 1], [], []>} : vector<16x32xbf16>, vector<32x16xbf16>, vector<16x16xf32> -> vector<16x16xf32>
    %c0_53 = arith.constant 0 : index
    %c1_54 = arith.constant 1 : index
    %c0_55 = arith.constant 0 : index
    %c0_56 = arith.constant 0 : index
    %79 = vector.load %arg5[%c0_53, %c1_54, %c0_55, %c0_56] : memref<2x2x1x16xf32, #tpu.memory_space<vmem>>, vector<1x1x1x16xf32>
    %80 = vector.shape_cast %79 : vector<1x1x1x16xf32> to vector<1x16xf32>
    %81 = vector.broadcast %80 : vector<1x16xf32> to vector<16x16xf32>
    %82 = arith.addf %78, %81 : vector<16x16xf32>
    %83 = vector.shape_cast %82 : vector<16x16xf32> to vector<2x8x16xf32>
    %c0_57 = arith.constant 0 : index
    %c1_58 = arith.constant 1 : index
    %c0_59 = arith.constant 0 : index
    %c0_60 = arith.constant 0 : index
    %84 = vector.load %arg6[%c0_57, %c1_58, %c0_59, %c0_60] : memref<2x2x32x16xbf16, #tpu.memory_space<vmem>>, vector<1x1x32x16xbf16>
    %85 = vector.shape_cast %84 : vector<1x1x32x16xbf16> to vector<32x16xbf16>
    %cst_61 = arith.constant dense<0.000000e+00> : vector<16x16xf32>
    %86 = tpu.matmul %26, %85, %cst_61 {dimension_numbers = #tpu.dot_dimension_numbers<[1], [0], [0], [1], [0, 0, 1, 1], [], []>} : vector<16x32xbf16>, vector<32x16xbf16>, vector<16x16xf32> -> vector<16x16xf32>
    %c0_62 = arith.constant 0 : index
    %c1_63 = arith.constant 1 : index
    %c0_64 = arith.constant 0 : index
    %c0_65 = arith.constant 0 : index
    %87 = vector.load %arg7[%c0_62, %c1_63, %c0_64, %c0_65] : memref<2x2x1x16xf32, #tpu.memory_space<vmem>>, vector<1x1x1x16xf32>
    %88 = vector.shape_cast %87 : vector<1x1x1x16xf32> to vector<1x16xf32>
    %89 = vector.broadcast %88 : vector<1x16xf32> to vector<16x16xf32>
    %90 = arith.addf %86, %89 : vector<16x16xf32>
    %91 = vector.shape_cast %90 : vector<16x16xf32> to vector<2x8x16xf32>
    %c0_66 = arith.constant 0 : index
    %c1_67 = arith.constant 1 : index
    %c0_68 = arith.constant 0 : index
    %c0_69 = arith.constant 0 : index
    %92 = vector.load %arg8[%c0_66, %c1_67, %c0_68, %c0_69] : memref<2x2x32x16xbf16, #tpu.memory_space<vmem>>, vector<1x1x32x16xbf16>
    %93 = vector.shape_cast %92 : vector<1x1x32x16xbf16> to vector<32x16xbf16>
    %cst_70 = arith.constant dense<0.000000e+00> : vector<16x16xf32>
    %94 = tpu.matmul %26, %93, %cst_70 {dimension_numbers = #tpu.dot_dimension_numbers<[1], [0], [0], [1], [0, 0, 1, 1], [], []>} : vector<16x32xbf16>, vector<32x16xbf16>, vector<16x16xf32> -> vector<16x16xf32>
    %c0_71 = arith.constant 0 : index
    %c1_72 = arith.constant 1 : index
    %c0_73 = arith.constant 0 : index
    %c0_74 = arith.constant 0 : index
    %95 = vector.load %arg9[%c0_71, %c1_72, %c0_73, %c0_74] : memref<2x2x1x16xf32, #tpu.memory_space<vmem>>, vector<1x1x1x16xf32>
    %96 = vector.shape_cast %95 : vector<1x1x1x16xf32> to vector<1x16xf32>
    %97 = vector.broadcast %96 : vector<1x16xf32> to vector<16x16xf32>
    %98 = arith.addf %94, %97 : vector<16x16xf32>
    %99 = vector.shape_cast %98 : vector<16x16xf32> to vector<2x8x16xf32>
    %100 = arith.truncf %83 : vector<2x8x16xf32> to vector<2x8x16xbf16>
    %101 = arith.truncf %91 : vector<2x8x16xf32> to vector<2x8x16xbf16>
    "tpu.trace_start"() <{level = 10 : i32, message = "bqd,bkd->bqk"}> : () -> ()
    %cst_75 = arith.constant dense<0.000000e+00> : vector<2x8x8xf32>
    %102 = tpu.matmul %100, %101, %cst_75 {dimension_numbers = #tpu.dot_dimension_numbers<[2], [2], [1], [1], [0, 0, 0, 1, 1, 1], [0], [0]>} : vector<2x8x16xbf16>, vector<2x8x16xbf16>, vector<2x8x8xf32> -> vector<2x8x8xf32>
    "tpu.trace_stop"() : () -> ()
    %103 = vector.broadcast %25 : vector<2x1x8xf32> to vector<2x8x8xf32>
    %104 = arith.addf %102, %103 : vector<2x8x8xf32>
    %cst_76 = arith.constant dense<0xFF800000> : vector<2x8xf32>
    %105 = vector.multi_reduction <maximumf>, %104, %cst_76 [2] : vector<2x8x8xf32> to vector<2x8xf32>
    %106 = vector.shape_cast %105 : vector<2x8xf32> to vector<2x8x1xf32>
    %107 = vector.broadcast %106 : vector<2x8x1xf32> to vector<2x8x8xf32>
    %108 = arith.subf %104, %107 : vector<2x8x8xf32>
    %109 = math.exp %108 : vector<2x8x8xf32>
    %cst_77 = arith.constant dense<0.000000e+00> : vector<2x8xf32>
    %110 = vector.multi_reduction <add>, %109, %cst_77 [2] : vector<2x8x8xf32> to vector<2x8xf32>
    %111 = vector.shape_cast %110 : vector<2x8xf32> to vector<2x8x1xf32>
    %112 = tpu.reciprocal %111 {approx = true} : vector<2x8x1xf32> -> vector<2x8x1xf32>
    %113 = vector.broadcast %112 : vector<2x8x1xf32> to vector<2x8x8xf32>
    %114 = arith.mulf %109, %113 : vector<2x8x8xf32>
    %115 = arith.truncf %114 : vector<2x8x8xf32> to vector<2x8x8xbf16>
    %116 = arith.truncf %99 : vector<2x8x16xf32> to vector<2x8x16xbf16>
    "tpu.trace_start"() <{level = 10 : i32, message = "bqk,bkd->bqd"}> : () -> ()
    %cst_78 = arith.constant dense<0.000000e+00> : vector<2x8x16xf32>
    %117 = tpu.matmul %115, %116, %cst_78 {dimension_numbers = #tpu.dot_dimension_numbers<[2], [1], [1], [2], [0, 0, 0, 1, 1, 2], [0], [0]>} : vector<2x8x8xbf16>, vector<2x8x16xbf16>, vector<2x8x16xf32> -> vector<2x8x16xf32>
    "tpu.trace_stop"() : () -> ()
    %118 = vector.shape_cast %117 : vector<2x8x16xf32> to vector<16x16xf32>
    %119 = arith.truncf %118 : vector<16x16xf32> to vector<16x16xbf16>
    %c0_79 = arith.constant 0 : index
    %c1_80 = arith.constant 1 : index
    %c0_81 = arith.constant 0 : index
    %c0_82 = arith.constant 0 : index
    %120 = vector.load %arg10[%c0_79, %c1_80, %c0_81, %c0_82] : memref<2x2x16x32xbf16, #tpu.memory_space<vmem>>, vector<1x1x16x32xbf16>
    %121 = vector.shape_cast %120 : vector<1x1x16x32xbf16> to vector<16x32xbf16>
    %cst_83 = arith.constant dense<0.000000e+00> : vector<16x32xf32>
    %122 = tpu.matmul %119, %121, %cst_83 {dimension_numbers = #tpu.dot_dimension_numbers<[1], [0], [0], [1], [0, 0, 1, 1], [], []>} : vector<16x16xbf16>, vector<16x32xbf16>, vector<16x32xf32> -> vector<16x32xf32>
    %123 = arith.addf %75, %122 : vector<16x32xf32>
    %c0_84 = arith.constant 0 : index
    %c0_85 = arith.constant 0 : index
    %c0_86 = arith.constant 0 : index
    %124 = vector.load %arg11[%c0_84, %c0_85, %c0_86] : memref<2x1x32xf32, #tpu.memory_space<vmem>>, vector<1x1x32xf32>
    %125 = vector.shape_cast %124 : vector<1x1x32xf32> to vector<1x32xf32>
    %126 = vector.broadcast %125 : vector<1x32xf32> to vector<16x32xf32>
    %127 = arith.addf %123, %126 : vector<16x32xf32>
    %128 = arith.addf %24, %127 : vector<16x32xf32>
    %c0_87 = arith.constant 0 : index
    %c0_88 = arith.constant 0 : index
    %c0_89 = arith.constant 0 : index
    %129 = vector.load %arg12[%c0_87, %c0_88, %c0_89] : memref<2x1x32xf32, #tpu.memory_space<vmem>>, vector<1x1x32xf32>
    %130 = vector.shape_cast %129 : vector<1x1x32xf32> to vector<1x32xf32>
    %c0_90 = arith.constant 0 : index
    %c0_91 = arith.constant 0 : index
    %c0_92 = arith.constant 0 : index
    %131 = vector.load %arg13[%c0_90, %c0_91, %c0_92] : memref<2x1x32xf32, #tpu.memory_space<vmem>>, vector<1x1x32xf32>
    %132 = vector.shape_cast %131 : vector<1x1x32xf32> to vector<1x32xf32>
    %cst_93 = arith.constant dense<0.000000e+00> : vector<16xf32>
    %133 = vector.multi_reduction <add>, %128, %cst_93 [1] : vector<16x32xf32> to vector<16xf32>
    %134 = vector.shape_cast %133 : vector<16xf32> to vector<16x1xf32>
    %cst_94 = arith.constant 3.200000e+01 : f32
    %135 = vector.broadcast %cst_94 : f32 to vector<16x1xf32>
    %136 = arith.divf %134, %135 : vector<16x1xf32>
    %137 = vector.broadcast %136 : vector<16x1xf32> to vector<16x32xf32>
    %138 = arith.subf %128, %137 : vector<16x32xf32>
    %139 = arith.mulf %138, %138 : vector<16x32xf32>
    %cst_95 = arith.constant dense<0.000000e+00> : vector<16xf32>
    %140 = vector.multi_reduction <add>, %139, %cst_95 [1] : vector<16x32xf32> to vector<16xf32>
    %141 = vector.shape_cast %140 : vector<16xf32> to vector<16x1xf32>
    %cst_96 = arith.constant 3.200000e+01 : f32
    %142 = vector.broadcast %cst_96 : f32 to vector<16x1xf32>
    %143 = arith.divf %141, %142 : vector<16x1xf32>
    %144 = vector.broadcast %136 : vector<16x1xf32> to vector<16x32xf32>
    %145 = arith.subf %128, %144 : vector<16x32xf32>
    %cst_97 = arith.constant 9.99999974E-6 : f32
    %146 = vector.broadcast %cst_97 : f32 to vector<16x1xf32>
    %147 = arith.addf %143, %146 : vector<16x1xf32>
    %148 = math.rsqrt %147 : vector<16x1xf32>
    %149 = vector.broadcast %148 : vector<16x1xf32> to vector<16x32xf32>
    %150 = arith.mulf %145, %149 : vector<16x32xf32>
    %151 = vector.broadcast %130 : vector<1x32xf32> to vector<16x32xf32>
    %152 = arith.mulf %150, %151 : vector<16x32xf32>
    %153 = vector.broadcast %132 : vector<1x32xf32> to vector<16x32xf32>
    %154 = arith.addf %152, %153 : vector<16x32xf32>
    %c0_98 = arith.constant 0 : index
    %c0_99 = arith.constant 0 : index
    %c0_100 = arith.constant 0 : index
    %155 = vector.load %arg14[%c0_98, %c0_99, %c0_100] : memref<2x32x64xbf16, #tpu.memory_space<vmem>>, vector<1x32x64xbf16>
    %156 = vector.shape_cast %155 : vector<1x32x64xbf16> to vector<32x64xbf16>
    %157 = arith.truncf %154 : vector<16x32xf32> to vector<16x32xbf16>
    %cst_101 = arith.constant dense<0.000000e+00> : vector<16x64xf32>
    %158 = tpu.matmul %157, %156, %cst_101 {dimension_numbers = #tpu.dot_dimension_numbers<[1], [0], [0], [1], [0, 0, 1, 1], [], []>} : vector<16x32xbf16>, vector<32x64xbf16>, vector<16x64xf32> -> vector<16x64xf32>
    %c0_102 = arith.constant 0 : index
    %c0_103 = arith.constant 0 : index
    %c0_104 = arith.constant 0 : index
    %159 = vector.load %arg15[%c0_102, %c0_103, %c0_104] : memref<2x1x64xf32, #tpu.memory_space<vmem>>, vector<1x1x64xf32>
    %160 = vector.shape_cast %159 : vector<1x1x64xf32> to vector<1x64xf32>
    %161 = vector.broadcast %160 : vector<1x64xf32> to vector<16x64xf32>
    %162 = arith.addf %158, %161 : vector<16x64xf32>
    %163 = arith.mulf %162, %162 : vector<16x64xf32>
    %164 = arith.mulf %162, %163 : vector<16x64xf32>
    %cst_105 = arith.constant 4.471500e-02 : f32
    %165 = vector.broadcast %cst_105 : f32 to vector<16x64xf32>
    %166 = arith.mulf %165, %164 : vector<16x64xf32>
    %167 = arith.addf %162, %166 : vector<16x64xf32>
    %cst_106 = arith.constant 0.797884583 : f32
    %168 = vector.broadcast %cst_106 : f32 to vector<16x64xf32>
    %169 = arith.mulf %168, %167 : vector<16x64xf32>
    %170 = math.tanh %169 : vector<16x64xf32>
    %cst_107 = arith.constant 1.000000e+00 : f32
    %171 = vector.broadcast %cst_107 : f32 to vector<16x64xf32>
    %172 = arith.addf %171, %170 : vector<16x64xf32>
    %cst_108 = arith.constant 5.000000e-01 : f32
    %173 = vector.broadcast %cst_108 : f32 to vector<16x64xf32>
    %174 = arith.mulf %173, %172 : vector<16x64xf32>
    %175 = arith.mulf %162, %174 : vector<16x64xf32>
    %c0_109 = arith.constant 0 : index
    %c0_110 = arith.constant 0 : index
    %c0_111 = arith.constant 0 : index
    %176 = vector.load %arg16[%c0_109, %c0_110, %c0_111] : memref<2x64x32xbf16, #tpu.memory_space<vmem>>, vector<1x64x32xbf16>
    %177 = vector.shape_cast %176 : vector<1x64x32xbf16> to vector<64x32xbf16>
    %178 = arith.truncf %175 : vector<16x64xf32> to vector<16x64xbf16>
    %cst_112 = arith.constant dense<0.000000e+00> : vector<16x32xf32>
    %179 = tpu.matmul %178, %177, %cst_112 {dimension_numbers = #tpu.dot_dimension_numbers<[1], [0], [0], [1], [0, 0, 1, 1], [], []>} : vector<16x64xbf16>, vector<64x32xbf16>, vector<16x32xf32> -> vector<16x32xf32>
    %c0_113 = arith.constant 0 : index
    %c0_114 = arith.constant 0 : index
    %c0_115 = arith.constant 0 : index
    %180 = vector.load %arg17[%c0_113, %c0_114, %c0_115] : memref<2x1x32xf32, #tpu.memory_space<vmem>>, vector<1x1x32xf32>
    %181 = vector.shape_cast %180 : vector<1x1x32xf32> to vector<1x32xf32>
    %182 = vector.broadcast %181 : vector<1x32xf32> to vector<16x32xf32>
    %183 = arith.addf %179, %182 : vector<16x32xf32>
    %184 = arith.addf %154, %183 : vector<16x32xf32>
    %c0_116 = arith.constant 0 : index
    %c0_117 = arith.constant 0 : index
    %c0_118 = arith.constant 0 : index
    %185 = vector.load %arg18[%c0_116, %c0_117, %c0_118] : memref<2x1x32xf32, #tpu.memory_space<vmem>>, vector<1x1x32xf32>
    %186 = vector.shape_cast %185 : vector<1x1x32xf32> to vector<1x32xf32>
    %c0_119 = arith.constant 0 : index
    %c0_120 = arith.constant 0 : index
    %c0_121 = arith.constant 0 : index
    %187 = vector.load %arg19[%c0_119, %c0_120, %c0_121] : memref<2x1x32xf32, #tpu.memory_space<vmem>>, vector<1x1x32xf32>
    %188 = vector.shape_cast %187 : vector<1x1x32xf32> to vector<1x32xf32>
    %cst_122 = arith.constant dense<0.000000e+00> : vector<16xf32>
    %189 = vector.multi_reduction <add>, %184, %cst_122 [1] : vector<16x32xf32> to vector<16xf32>
    %190 = vector.shape_cast %189 : vector<16xf32> to vector<16x1xf32>
    %cst_123 = arith.constant 3.200000e+01 : f32
    %191 = vector.broadcast %cst_123 : f32 to vector<16x1xf32>
    %192 = arith.divf %190, %191 : vector<16x1xf32>
    %193 = vector.broadcast %192 : vector<16x1xf32> to vector<16x32xf32>
    %194 = arith.subf %184, %193 : vector<16x32xf32>
    %195 = arith.mulf %194, %194 : vector<16x32xf32>
    %cst_124 = arith.constant dense<0.000000e+00> : vector<16xf32>
    %196 = vector.multi_reduction <add>, %195, %cst_124 [1] : vector<16x32xf32> to vector<16xf32>
    %197 = vector.shape_cast %196 : vector<16xf32> to vector<16x1xf32>
    %cst_125 = arith.constant 3.200000e+01 : f32
    %198 = vector.broadcast %cst_125 : f32 to vector<16x1xf32>
    %199 = arith.divf %197, %198 : vector<16x1xf32>
    %200 = vector.broadcast %192 : vector<16x1xf32> to vector<16x32xf32>
    %201 = arith.subf %184, %200 : vector<16x32xf32>
    %cst_126 = arith.constant 9.99999974E-6 : f32
    %202 = vector.broadcast %cst_126 : f32 to vector<16x1xf32>
    %203 = arith.addf %199, %202 : vector<16x1xf32>
    %204 = math.rsqrt %203 : vector<16x1xf32>
    %205 = vector.broadcast %204 : vector<16x1xf32> to vector<16x32xf32>
    %206 = arith.mulf %201, %205 : vector<16x32xf32>
    %207 = vector.broadcast %186 : vector<1x32xf32> to vector<16x32xf32>
    %208 = arith.mulf %206, %207 : vector<16x32xf32>
    %209 = vector.broadcast %188 : vector<1x32xf32> to vector<16x32xf32>
    %210 = arith.addf %208, %209 : vector<16x32xf32>
    %211 = arith.truncf %210 : vector<16x32xf32> to vector<16x32xbf16>
    %cst_127 = arith.constant 0.000000e+00 : f32
    %212 = vector.broadcast %cst_127 : f32 to vector<16x32xf32>
    %c1_128 = arith.constant 1 : index
    %c0_129 = arith.constant 0 : index
    %c0_130 = arith.constant 0 : index
    %c0_131 = arith.constant 0 : index
    %213 = vector.load %arg4[%c1_128, %c0_129, %c0_130, %c0_131] : memref<2x2x32x16xbf16, #tpu.memory_space<vmem>>, vector<1x1x32x16xbf16>
    %214 = vector.shape_cast %213 : vector<1x1x32x16xbf16> to vector<32x16xbf16>
    %cst_132 = arith.constant dense<0.000000e+00> : vector<16x16xf32>
    %215 = tpu.matmul %211, %214, %cst_132 {dimension_numbers = #tpu.dot_dimension_numbers<[1], [0], [0], [1], [0, 0, 1, 1], [], []>} : vector<16x32xbf16>, vector<32x16xbf16>, vector<16x16xf32> -> vector<16x16xf32>
    %c1_133 = arith.constant 1 : index
    %c0_134 = arith.constant 0 : index
    %c0_135 = arith.constant 0 : index
    %c0_136 = arith.constant 0 : index
    %216 = vector.load %arg5[%c1_133, %c0_134, %c0_135, %c0_136] : memref<2x2x1x16xf32, #tpu.memory_space<vmem>>, vector<1x1x1x16xf32>
    %217 = vector.shape_cast %216 : vector<1x1x1x16xf32> to vector<1x16xf32>
    %218 = vector.broadcast %217 : vector<1x16xf32> to vector<16x16xf32>
    %219 = arith.addf %215, %218 : vector<16x16xf32>
    %220 = vector.shape_cast %219 : vector<16x16xf32> to vector<2x8x16xf32>
    %c1_137 = arith.constant 1 : index
    %c0_138 = arith.constant 0 : index
    %c0_139 = arith.constant 0 : index
    %c0_140 = arith.constant 0 : index
    %221 = vector.load %arg6[%c1_137, %c0_138, %c0_139, %c0_140] : memref<2x2x32x16xbf16, #tpu.memory_space<vmem>>, vector<1x1x32x16xbf16>
    %222 = vector.shape_cast %221 : vector<1x1x32x16xbf16> to vector<32x16xbf16>
    %cst_141 = arith.constant dense<0.000000e+00> : vector<16x16xf32>
    %223 = tpu.matmul %211, %222, %cst_141 {dimension_numbers = #tpu.dot_dimension_numbers<[1], [0], [0], [1], [0, 0, 1, 1], [], []>} : vector<16x32xbf16>, vector<32x16xbf16>, vector<16x16xf32> -> vector<16x16xf32>
    %c1_142 = arith.constant 1 : index
    %c0_143 = arith.constant 0 : index
    %c0_144 = arith.constant 0 : index
    %c0_145 = arith.constant 0 : index
    %224 = vector.load %arg7[%c1_142, %c0_143, %c0_144, %c0_145] : memref<2x2x1x16xf32, #tpu.memory_space<vmem>>, vector<1x1x1x16xf32>
    %225 = vector.shape_cast %224 : vector<1x1x1x16xf32> to vector<1x16xf32>
    %226 = vector.broadcast %225 : vector<1x16xf32> to vector<16x16xf32>
    %227 = arith.addf %223, %226 : vector<16x16xf32>
    %228 = vector.shape_cast %227 : vector<16x16xf32> to vector<2x8x16xf32>
    %c1_146 = arith.constant 1 : index
    %c0_147 = arith.constant 0 : index
    %c0_148 = arith.constant 0 : index
    %c0_149 = arith.constant 0 : index
    %229 = vector.load %arg8[%c1_146, %c0_147, %c0_148, %c0_149] : memref<2x2x32x16xbf16, #tpu.memory_space<vmem>>, vector<1x1x32x16xbf16>
    %230 = vector.shape_cast %229 : vector<1x1x32x16xbf16> to vector<32x16xbf16>
    %cst_150 = arith.constant dense<0.000000e+00> : vector<16x16xf32>
    %231 = tpu.matmul %211, %230, %cst_150 {dimension_numbers = #tpu.dot_dimension_numbers<[1], [0], [0], [1], [0, 0, 1, 1], [], []>} : vector<16x32xbf16>, vector<32x16xbf16>, vector<16x16xf32> -> vector<16x16xf32>
    %c1_151 = arith.constant 1 : index
    %c0_152 = arith.constant 0 : index
    %c0_153 = arith.constant 0 : index
    %c0_154 = arith.constant 0 : index
    %232 = vector.load %arg9[%c1_151, %c0_152, %c0_153, %c0_154] : memref<2x2x1x16xf32, #tpu.memory_space<vmem>>, vector<1x1x1x16xf32>
    %233 = vector.shape_cast %232 : vector<1x1x1x16xf32> to vector<1x16xf32>
    %234 = vector.broadcast %233 : vector<1x16xf32> to vector<16x16xf32>
    %235 = arith.addf %231, %234 : vector<16x16xf32>
    %236 = vector.shape_cast %235 : vector<16x16xf32> to vector<2x8x16xf32>
    %237 = arith.truncf %220 : vector<2x8x16xf32> to vector<2x8x16xbf16>
    %238 = arith.truncf %228 : vector<2x8x16xf32> to vector<2x8x16xbf16>
    "tpu.trace_start"() <{level = 10 : i32, message = "bqd,bkd->bqk"}> : () -> ()
    %cst_155 = arith.constant dense<0.000000e+00> : vector<2x8x8xf32>
    %239 = tpu.matmul %237, %238, %cst_155 {dimension_numbers = #tpu.dot_dimension_numbers<[2], [2], [1], [1], [0, 0, 0, 1, 1, 1], [0], [0]>} : vector<2x8x16xbf16>, vector<2x8x16xbf16>, vector<2x8x8xf32> -> vector<2x8x8xf32>
    "tpu.trace_stop"() : () -> ()
    %240 = vector.broadcast %25 : vector<2x1x8xf32> to vector<2x8x8xf32>
    %241 = arith.addf %239, %240 : vector<2x8x8xf32>
    %cst_156 = arith.constant dense<0xFF800000> : vector<2x8xf32>
    %242 = vector.multi_reduction <maximumf>, %241, %cst_156 [2] : vector<2x8x8xf32> to vector<2x8xf32>
    %243 = vector.shape_cast %242 : vector<2x8xf32> to vector<2x8x1xf32>
    %244 = vector.broadcast %243 : vector<2x8x1xf32> to vector<2x8x8xf32>
    %245 = arith.subf %241, %244 : vector<2x8x8xf32>
    %246 = math.exp %245 : vector<2x8x8xf32>
    %cst_157 = arith.constant dense<0.000000e+00> : vector<2x8xf32>
    %247 = vector.multi_reduction <add>, %246, %cst_157 [2] : vector<2x8x8xf32> to vector<2x8xf32>
    %248 = vector.shape_cast %247 : vector<2x8xf32> to vector<2x8x1xf32>
    %249 = tpu.reciprocal %248 {approx = true} : vector<2x8x1xf32> -> vector<2x8x1xf32>
    %250 = vector.broadcast %249 : vector<2x8x1xf32> to vector<2x8x8xf32>
    %251 = arith.mulf %246, %250 : vector<2x8x8xf32>
    %252 = arith.truncf %251 : vector<2x8x8xf32> to vector<2x8x8xbf16>
    %253 = arith.truncf %236 : vector<2x8x16xf32> to vector<2x8x16xbf16>
    "tpu.trace_start"() <{level = 10 : i32, message = "bqk,bkd->bqd"}> : () -> ()
    %cst_158 = arith.constant dense<0.000000e+00> : vector<2x8x16xf32>
    %254 = tpu.matmul %252, %253, %cst_158 {dimension_numbers = #tpu.dot_dimension_numbers<[2], [1], [1], [2], [0, 0, 0, 1, 1, 2], [0], [0]>} : vector<2x8x8xbf16>, vector<2x8x16xbf16>, vector<2x8x16xf32> -> vector<2x8x16xf32>
    "tpu.trace_stop"() : () -> ()
    %255 = vector.shape_cast %254 : vector<2x8x16xf32> to vector<16x16xf32>
    %256 = arith.truncf %255 : vector<16x16xf32> to vector<16x16xbf16>
    %c1_159 = arith.constant 1 : index
    %c0_160 = arith.constant 0 : index
    %c0_161 = arith.constant 0 : index
    %c0_162 = arith.constant 0 : index
    %257 = vector.load %arg10[%c1_159, %c0_160, %c0_161, %c0_162] : memref<2x2x16x32xbf16, #tpu.memory_space<vmem>>, vector<1x1x16x32xbf16>
    %258 = vector.shape_cast %257 : vector<1x1x16x32xbf16> to vector<16x32xbf16>
    %cst_163 = arith.constant dense<0.000000e+00> : vector<16x32xf32>
    %259 = tpu.matmul %256, %258, %cst_163 {dimension_numbers = #tpu.dot_dimension_numbers<[1], [0], [0], [1], [0, 0, 1, 1], [], []>} : vector<16x16xbf16>, vector<16x32xbf16>, vector<16x32xf32> -> vector<16x32xf32>
    %260 = arith.addf %212, %259 : vector<16x32xf32>
    %c1_164 = arith.constant 1 : index
    %c1_165 = arith.constant 1 : index
    %c0_166 = arith.constant 0 : index
    %c0_167 = arith.constant 0 : index
    %261 = vector.load %arg4[%c1_164, %c1_165, %c0_166, %c0_167] : memref<2x2x32x16xbf16, #tpu.memory_space<vmem>>, vector<1x1x32x16xbf16>
    %262 = vector.shape_cast %261 : vector<1x1x32x16xbf16> to vector<32x16xbf16>
    %cst_168 = arith.constant dense<0.000000e+00> : vector<16x16xf32>
    %263 = tpu.matmul %211, %262, %cst_168 {dimension_numbers = #tpu.dot_dimension_numbers<[1], [0], [0], [1], [0, 0, 1, 1], [], []>} : vector<16x32xbf16>, vector<32x16xbf16>, vector<16x16xf32> -> vector<16x16xf32>
    %c1_169 = arith.constant 1 : index
    %c1_170 = arith.constant 1 : index
    %c0_171 = arith.constant 0 : index
    %c0_172 = arith.constant 0 : index
    %264 = vector.load %arg5[%c1_169, %c1_170, %c0_171, %c0_172] : memref<2x2x1x16xf32, #tpu.memory_space<vmem>>, vector<1x1x1x16xf32>
    %265 = vector.shape_cast %264 : vector<1x1x1x16xf32> to vector<1x16xf32>
    %266 = vector.broadcast %265 : vector<1x16xf32> to vector<16x16xf32>
    %267 = arith.addf %263, %266 : vector<16x16xf32>
    %268 = vector.shape_cast %267 : vector<16x16xf32> to vector<2x8x16xf32>
    %c1_173 = arith.constant 1 : index
    %c1_174 = arith.constant 1 : index
    %c0_175 = arith.constant 0 : index
    %c0_176 = arith.constant 0 : index
    %269 = vector.load %arg6[%c1_173, %c1_174, %c0_175, %c0_176] : memref<2x2x32x16xbf16, #tpu.memory_space<vmem>>, vector<1x1x32x16xbf16>
    %270 = vector.shape_cast %269 : vector<1x1x32x16xbf16> to vector<32x16xbf16>
    %cst_177 = arith.constant dense<0.000000e+00> : vector<16x16xf32>
    %271 = tpu.matmul %211, %270, %cst_177 {dimension_numbers = #tpu.dot_dimension_numbers<[1], [0], [0], [1], [0, 0, 1, 1], [], []>} : vector<16x32xbf16>, vector<32x16xbf16>, vector<16x16xf32> -> vector<16x16xf32>
    %c1_178 = arith.constant 1 : index
    %c1_179 = arith.constant 1 : index
    %c0_180 = arith.constant 0 : index
    %c0_181 = arith.constant 0 : index
    %272 = vector.load %arg7[%c1_178, %c1_179, %c0_180, %c0_181] : memref<2x2x1x16xf32, #tpu.memory_space<vmem>>, vector<1x1x1x16xf32>
    %273 = vector.shape_cast %272 : vector<1x1x1x16xf32> to vector<1x16xf32>
    %274 = vector.broadcast %273 : vector<1x16xf32> to vector<16x16xf32>
    %275 = arith.addf %271, %274 : vector<16x16xf32>
    %276 = vector.shape_cast %275 : vector<16x16xf32> to vector<2x8x16xf32>
    %c1_182 = arith.constant 1 : index
    %c1_183 = arith.constant 1 : index
    %c0_184 = arith.constant 0 : index
    %c0_185 = arith.constant 0 : index
    %277 = vector.load %arg8[%c1_182, %c1_183, %c0_184, %c0_185] : memref<2x2x32x16xbf16, #tpu.memory_space<vmem>>, vector<1x1x32x16xbf16>
    %278 = vector.shape_cast %277 : vector<1x1x32x16xbf16> to vector<32x16xbf16>
    %cst_186 = arith.constant dense<0.000000e+00> : vector<16x16xf32>
    %279 = tpu.matmul %211, %278, %cst_186 {dimension_numbers = #tpu.dot_dimension_numbers<[1], [0], [0], [1], [0, 0, 1, 1], [], []>} : vector<16x32xbf16>, vector<32x16xbf16>, vector<16x16xf32> -> vector<16x16xf32>
    %c1_187 = arith.constant 1 : index
    %c1_188 = arith.constant 1 : index
    %c0_189 = arith.constant 0 : index
    %c0_190 = arith.constant 0 : index
    %280 = vector.load %arg9[%c1_187, %c1_188, %c0_189, %c0_190] : memref<2x2x1x16xf32, #tpu.memory_space<vmem>>, vector<1x1x1x16xf32>
    %281 = vector.shape_cast %280 : vector<1x1x1x16xf32> to vector<1x16xf32>
    %282 = vector.broadcast %281 : vector<1x16xf32> to vector<16x16xf32>
    %283 = arith.addf %279, %282 : vector<16x16xf32>
    %284 = vector.shape_cast %283 : vector<16x16xf32> to vector<2x8x16xf32>
    %285 = arith.truncf %268 : vector<2x8x16xf32> to vector<2x8x16xbf16>
    %286 = arith.truncf %276 : vector<2x8x16xf32> to vector<2x8x16xbf16>
    "tpu.trace_start"() <{level = 10 : i32, message = "bqd,bkd->bqk"}> : () -> ()
    %cst_191 = arith.constant dense<0.000000e+00> : vector<2x8x8xf32>
    %287 = tpu.matmul %285, %286, %cst_191 {dimension_numbers = #tpu.dot_dimension_numbers<[2], [2], [1], [1], [0, 0, 0, 1, 1, 1], [0], [0]>} : vector<2x8x16xbf16>, vector<2x8x16xbf16>, vector<2x8x8xf32> -> vector<2x8x8xf32>
    "tpu.trace_stop"() : () -> ()
    %288 = vector.broadcast %25 : vector<2x1x8xf32> to vector<2x8x8xf32>
    %289 = arith.addf %287, %288 : vector<2x8x8xf32>
    %cst_192 = arith.constant dense<0xFF800000> : vector<2x8xf32>
    %290 = vector.multi_reduction <maximumf>, %289, %cst_192 [2] : vector<2x8x8xf32> to vector<2x8xf32>
    %291 = vector.shape_cast %290 : vector<2x8xf32> to vector<2x8x1xf32>
    %292 = vector.broadcast %291 : vector<2x8x1xf32> to vector<2x8x8xf32>
    %293 = arith.subf %289, %292 : vector<2x8x8xf32>
    %294 = math.exp %293 : vector<2x8x8xf32>
    %cst_193 = arith.constant dense<0.000000e+00> : vector<2x8xf32>
    %295 = vector.multi_reduction <add>, %294, %cst_193 [2] : vector<2x8x8xf32> to vector<2x8xf32>
    %296 = vector.shape_cast %295 : vector<2x8xf32> to vector<2x8x1xf32>
    %297 = tpu.reciprocal %296 {approx = true} : vector<2x8x1xf32> -> vector<2x8x1xf32>
    %298 = vector.broadcast %297 : vector<2x8x1xf32> to vector<2x8x8xf32>
    %299 = arith.mulf %294, %298 : vector<2x8x8xf32>
    %300 = arith.truncf %299 : vector<2x8x8xf32> to vector<2x8x8xbf16>
    %301 = arith.truncf %284 : vector<2x8x16xf32> to vector<2x8x16xbf16>
    "tpu.trace_start"() <{level = 10 : i32, message = "bqk,bkd->bqd"}> : () -> ()
    %cst_194 = arith.constant dense<0.000000e+00> : vector<2x8x16xf32>
    %302 = tpu.matmul %300, %301, %cst_194 {dimension_numbers = #tpu.dot_dimension_numbers<[2], [1], [1], [2], [0, 0, 0, 1, 1, 2], [0], [0]>} : vector<2x8x8xbf16>, vector<2x8x16xbf16>, vector<2x8x16xf32> -> vector<2x8x16xf32>
    "tpu.trace_stop"() : () -> ()
    %303 = vector.shape_cast %302 : vector<2x8x16xf32> to vector<16x16xf32>
    %304 = arith.truncf %303 : vector<16x16xf32> to vector<16x16xbf16>
    %c1_195 = arith.constant 1 : index
    %c1_196 = arith.constant 1 : index
    %c0_197 = arith.constant 0 : index
    %c0_198 = arith.constant 0 : index
    %305 = vector.load %arg10[%c1_195, %c1_196, %c0_197, %c0_198] : memref<2x2x16x32xbf16, #tpu.memory_space<vmem>>, vector<1x1x16x32xbf16>
    %306 = vector.shape_cast %305 : vector<1x1x16x32xbf16> to vector<16x32xbf16>
    %cst_199 = arith.constant dense<0.000000e+00> : vector<16x32xf32>
    %307 = tpu.matmul %304, %306, %cst_199 {dimension_numbers = #tpu.dot_dimension_numbers<[1], [0], [0], [1], [0, 0, 1, 1], [], []>} : vector<16x16xbf16>, vector<16x32xbf16>, vector<16x32xf32> -> vector<16x32xf32>
    %308 = arith.addf %260, %307 : vector<16x32xf32>
    %c1_200 = arith.constant 1 : index
    %c0_201 = arith.constant 0 : index
    %c0_202 = arith.constant 0 : index
    %309 = vector.load %arg11[%c1_200, %c0_201, %c0_202] : memref<2x1x32xf32, #tpu.memory_space<vmem>>, vector<1x1x32xf32>
    %310 = vector.shape_cast %309 : vector<1x1x32xf32> to vector<1x32xf32>
    %311 = vector.broadcast %310 : vector<1x32xf32> to vector<16x32xf32>
    %312 = arith.addf %308, %311 : vector<16x32xf32>
    %313 = arith.addf %210, %312 : vector<16x32xf32>
    %c1_203 = arith.constant 1 : index
    %c0_204 = arith.constant 0 : index
    %c0_205 = arith.constant 0 : index
    %314 = vector.load %arg12[%c1_203, %c0_204, %c0_205] : memref<2x1x32xf32, #tpu.memory_space<vmem>>, vector<1x1x32xf32>
    %315 = vector.shape_cast %314 : vector<1x1x32xf32> to vector<1x32xf32>
    %c1_206 = arith.constant 1 : index
    %c0_207 = arith.constant 0 : index
    %c0_208 = arith.constant 0 : index
    %316 = vector.load %arg13[%c1_206, %c0_207, %c0_208] : memref<2x1x32xf32, #tpu.memory_space<vmem>>, vector<1x1x32xf32>
    %317 = vector.shape_cast %316 : vector<1x1x32xf32> to vector<1x32xf32>
    %cst_209 = arith.constant dense<0.000000e+00> : vector<16xf32>
    %318 = vector.multi_reduction <add>, %313, %cst_209 [1] : vector<16x32xf32> to vector<16xf32>
    %319 = vector.shape_cast %318 : vector<16xf32> to vector<16x1xf32>
    %cst_210 = arith.constant 3.200000e+01 : f32
    %320 = vector.broadcast %cst_210 : f32 to vector<16x1xf32>
    %321 = arith.divf %319, %320 : vector<16x1xf32>
    %322 = vector.broadcast %321 : vector<16x1xf32> to vector<16x32xf32>
    %323 = arith.subf %313, %322 : vector<16x32xf32>
    %324 = arith.mulf %323, %323 : vector<16x32xf32>
    %cst_211 = arith.constant dense<0.000000e+00> : vector<16xf32>
    %325 = vector.multi_reduction <add>, %324, %cst_211 [1] : vector<16x32xf32> to vector<16xf32>
    %326 = vector.shape_cast %325 : vector<16xf32> to vector<16x1xf32>
    %cst_212 = arith.constant 3.200000e+01 : f32
    %327 = vector.broadcast %cst_212 : f32 to vector<16x1xf32>
    %328 = arith.divf %326, %327 : vector<16x1xf32>
    %329 = vector.broadcast %321 : vector<16x1xf32> to vector<16x32xf32>
    %330 = arith.subf %313, %329 : vector<16x32xf32>
    %cst_213 = arith.constant 9.99999974E-6 : f32
    %331 = vector.broadcast %cst_213 : f32 to vector<16x1xf32>
    %332 = arith.addf %328, %331 : vector<16x1xf32>
    %333 = math.rsqrt %332 : vector<16x1xf32>
    %334 = vector.broadcast %333 : vector<16x1xf32> to vector<16x32xf32>
    %335 = arith.mulf %330, %334 : vector<16x32xf32>
    %336 = vector.broadcast %315 : vector<1x32xf32> to vector<16x32xf32>
    %337 = arith.mulf %335, %336 : vector<16x32xf32>
    %338 = vector.broadcast %317 : vector<1x32xf32> to vector<16x32xf32>
    %339 = arith.addf %337, %338 : vector<16x32xf32>
    %c1_214 = arith.constant 1 : index
    %c0_215 = arith.constant 0 : index
    %c0_216 = arith.constant 0 : index
    %340 = vector.load %arg14[%c1_214, %c0_215, %c0_216] : memref<2x32x64xbf16, #tpu.memory_space<vmem>>, vector<1x32x64xbf16>
    %341 = vector.shape_cast %340 : vector<1x32x64xbf16> to vector<32x64xbf16>
    %342 = arith.truncf %339 : vector<16x32xf32> to vector<16x32xbf16>
    %cst_217 = arith.constant dense<0.000000e+00> : vector<16x64xf32>
    %343 = tpu.matmul %342, %341, %cst_217 {dimension_numbers = #tpu.dot_dimension_numbers<[1], [0], [0], [1], [0, 0, 1, 1], [], []>} : vector<16x32xbf16>, vector<32x64xbf16>, vector<16x64xf32> -> vector<16x64xf32>
    %c1_218 = arith.constant 1 : index
    %c0_219 = arith.constant 0 : index
    %c0_220 = arith.constant 0 : index
    %344 = vector.load %arg15[%c1_218, %c0_219, %c0_220] : memref<2x1x64xf32, #tpu.memory_space<vmem>>, vector<1x1x64xf32>
    %345 = vector.shape_cast %344 : vector<1x1x64xf32> to vector<1x64xf32>
    %346 = vector.broadcast %345 : vector<1x64xf32> to vector<16x64xf32>
    %347 = arith.addf %343, %346 : vector<16x64xf32>
    %348 = arith.mulf %347, %347 : vector<16x64xf32>
    %349 = arith.mulf %347, %348 : vector<16x64xf32>
    %cst_221 = arith.constant 4.471500e-02 : f32
    %350 = vector.broadcast %cst_221 : f32 to vector<16x64xf32>
    %351 = arith.mulf %350, %349 : vector<16x64xf32>
    %352 = arith.addf %347, %351 : vector<16x64xf32>
    %cst_222 = arith.constant 0.797884583 : f32
    %353 = vector.broadcast %cst_222 : f32 to vector<16x64xf32>
    %354 = arith.mulf %353, %352 : vector<16x64xf32>
    %355 = math.tanh %354 : vector<16x64xf32>
    %cst_223 = arith.constant 1.000000e+00 : f32
    %356 = vector.broadcast %cst_223 : f32 to vector<16x64xf32>
    %357 = arith.addf %356, %355 : vector<16x64xf32>
    %cst_224 = arith.constant 5.000000e-01 : f32
    %358 = vector.broadcast %cst_224 : f32 to vector<16x64xf32>
    %359 = arith.mulf %358, %357 : vector<16x64xf32>
    %360 = arith.mulf %347, %359 : vector<16x64xf32>
    %c1_225 = arith.constant 1 : index
    %c0_226 = arith.constant 0 : index
    %c0_227 = arith.constant 0 : index
    %361 = vector.load %arg16[%c1_225, %c0_226, %c0_227] : memref<2x64x32xbf16, #tpu.memory_space<vmem>>, vector<1x64x32xbf16>
    %362 = vector.shape_cast %361 : vector<1x64x32xbf16> to vector<64x32xbf16>
    %363 = arith.truncf %360 : vector<16x64xf32> to vector<16x64xbf16>
    %cst_228 = arith.constant dense<0.000000e+00> : vector<16x32xf32>
    %364 = tpu.matmul %363, %362, %cst_228 {dimension_numbers = #tpu.dot_dimension_numbers<[1], [0], [0], [1], [0, 0, 1, 1], [], []>} : vector<16x64xbf16>, vector<64x32xbf16>, vector<16x32xf32> -> vector<16x32xf32>
    %c1_229 = arith.constant 1 : index
    %c0_230 = arith.constant 0 : index
    %c0_231 = arith.constant 0 : index
    %365 = vector.load %arg17[%c1_229, %c0_230, %c0_231] : memref<2x1x32xf32, #tpu.memory_space<vmem>>, vector<1x1x32xf32>
    %366 = vector.shape_cast %365 : vector<1x1x32xf32> to vector<1x32xf32>
    %367 = vector.broadcast %366 : vector<1x32xf32> to vector<16x32xf32>
    %368 = arith.addf %364, %367 : vector<16x32xf32>
    %369 = arith.addf %339, %368 : vector<16x32xf32>
    %c1_232 = arith.constant 1 : index
    %c0_233 = arith.constant 0 : index
    %c0_234 = arith.constant 0 : index
    %370 = vector.load %arg18[%c1_232, %c0_233, %c0_234] : memref<2x1x32xf32, #tpu.memory_space<vmem>>, vector<1x1x32xf32>
    %371 = vector.shape_cast %370 : vector<1x1x32xf32> to vector<1x32xf32>
    %c1_235 = arith.constant 1 : index
    %c0_236 = arith.constant 0 : index
    %c0_237 = arith.constant 0 : index
    %372 = vector.load %arg19[%c1_235, %c0_236, %c0_237] : memref<2x1x32xf32, #tpu.memory_space<vmem>>, vector<1x1x32xf32>
    %373 = vector.shape_cast %372 : vector<1x1x32xf32> to vector<1x32xf32>
    %cst_238 = arith.constant dense<0.000000e+00> : vector<16xf32>
    %374 = vector.multi_reduction <add>, %369, %cst_238 [1] : vector<16x32xf32> to vector<16xf32>
    %375 = vector.shape_cast %374 : vector<16xf32> to vector<16x1xf32>
    %cst_239 = arith.constant 3.200000e+01 : f32
    %376 = vector.broadcast %cst_239 : f32 to vector<16x1xf32>
    %377 = arith.divf %375, %376 : vector<16x1xf32>
    %378 = vector.broadcast %377 : vector<16x1xf32> to vector<16x32xf32>
    %379 = arith.subf %369, %378 : vector<16x32xf32>
    %380 = arith.mulf %379, %379 : vector<16x32xf32>
    %cst_240 = arith.constant dense<0.000000e+00> : vector<16xf32>
    %381 = vector.multi_reduction <add>, %380, %cst_240 [1] : vector<16x32xf32> to vector<16xf32>
    %382 = vector.shape_cast %381 : vector<16xf32> to vector<16x1xf32>
    %cst_241 = arith.constant 3.200000e+01 : f32
    %383 = vector.broadcast %cst_241 : f32 to vector<16x1xf32>
    %384 = arith.divf %382, %383 : vector<16x1xf32>
    %385 = vector.broadcast %377 : vector<16x1xf32> to vector<16x32xf32>
    %386 = arith.subf %369, %385 : vector<16x32xf32>
    %cst_242 = arith.constant 9.99999974E-6 : f32
    %387 = vector.broadcast %cst_242 : f32 to vector<16x1xf32>
    %388 = arith.addf %384, %387 : vector<16x1xf32>
    %389 = math.rsqrt %388 : vector<16x1xf32>
    %390 = vector.broadcast %389 : vector<16x1xf32> to vector<16x32xf32>
    %391 = arith.mulf %386, %390 : vector<16x32xf32>
    %392 = vector.broadcast %371 : vector<1x32xf32> to vector<16x32xf32>
    %393 = arith.mulf %391, %392 : vector<16x32xf32>
    %394 = vector.broadcast %373 : vector<1x32xf32> to vector<16x32xf32>
    %395 = arith.addf %393, %394 : vector<16x32xf32>
    %396 = vector.shape_cast %395 : vector<16x32xf32> to vector<2x8x32xf32>
    %cst_243 = arith.constant dense<0.000000e+00> : vector<2x32xf32>
    %397 = vector.multi_reduction <add>, %396, %cst_243 [1] : vector<2x8x32xf32> to vector<2x32xf32>
    %cst_244 = arith.constant 8.000000e+00 : f32
    %398 = vector.broadcast %cst_244 : f32 to vector<2x32xf32>
    %399 = arith.divf %397, %398 : vector<2x32xf32>
    %c0_245 = arith.constant 0 : index
    %c0_246 = arith.constant 0 : index
    %400 = vector.load %arg20[%c0_245, %c0_246] : memref<32x32xbf16, #tpu.memory_space<vmem>>, vector<32x32xbf16>
    %401 = arith.truncf %399 : vector<2x32xf32> to vector<2x32xbf16>
    %cst_247 = arith.constant dense<0.000000e+00> : vector<2x32xf32>
    %402 = tpu.matmul %401, %400, %cst_247 {dimension_numbers = #tpu.dot_dimension_numbers<[1], [0], [0], [1], [0, 0, 1, 1], [], []>} : vector<2x32xbf16>, vector<32x32xbf16>, vector<2x32xf32> -> vector<2x32xf32>
    %c0_248 = arith.constant 0 : index
    %c0_249 = arith.constant 0 : index
    %403 = vector.load %arg21[%c0_248, %c0_249] : memref<1x32xf32, #tpu.memory_space<vmem>>, vector<1x32xf32>
    %404 = vector.broadcast %403 : vector<1x32xf32> to vector<2x32xf32>
    %405 = arith.addf %402, %404 : vector<2x32xf32>
    %cst_250 = arith.constant 0.000000e+00 : f32
    %406 = vector.broadcast %cst_250 : f32 to vector<2x32xf32>
    %407 = arith.maximumf %405, %406 : vector<2x32xf32>
    %c0_251 = arith.constant 0 : index
    %c0_252 = arith.constant 0 : index
    %408 = vector.load %arg22[%c0_251, %c0_252] : memref<32x128xbf16, #tpu.memory_space<vmem>>, vector<32x128xbf16>
    %409 = arith.truncf %407 : vector<2x32xf32> to vector<2x32xbf16>
    %cst_253 = arith.constant dense<0.000000e+00> : vector<2x128xf32>
    %410 = tpu.matmul %409, %408, %cst_253 {dimension_numbers = #tpu.dot_dimension_numbers<[1], [0], [0], [1], [0, 0, 1, 1], [], []>} : vector<2x32xbf16>, vector<32x128xbf16>, vector<2x128xf32> -> vector<2x128xf32>
    %c0_254 = arith.constant 0 : index
    %c0_255 = arith.constant 0 : index
    %411 = vector.load %arg23[%c0_254, %c0_255] : memref<1x128xf32, #tpu.memory_space<vmem>>, vector<1x128xf32>
    %412 = vector.broadcast %411 : vector<1x128xf32> to vector<2x128xf32>
    %413 = arith.addf %410, %412 : vector<2x128xf32>
    %c0_256 = arith.constant 0 : index
    %c0_257 = arith.constant 0 : index
    %414 = vector.load %arg24[%c0_256, %c0_257] : memref<2x128xf32, #tpu.memory_space<vmem>>, vector<2x128xf32>
    tpu.vector_store %arg24[%c0_256, %c0_257], %413 {strides = array<i32>} : memref<2x128xf32, #tpu.memory_space<vmem>>, vector<2x128xf32>,
    return
  }
}

</mosaic_0001>

<bundles_post_ra>
// kernel: roberta_classifier_forward.1
= control target key start
LH: loop header
LB: loop body
LE: loop exit
PB: predicated region body
PF: predicated region fallthrough
CT: control target
= control target key end

     0   :  { %s4091_s0 = inlined_call_operand.vmem [shape: f32[16,32], index: 0, kind: input, shape index: {}]   ;;  %s4092_s1 = inlined_call_operand.vmem [shape: f32[2,1,8], index: 1, kind: input, shape index: {}]   ;;  %s4093_s2 = inlined_call_operand.vmem [shape: f32[1,32], index: 2, kind: input, shape index: {}]   ;;  %s4094_s3 = inlined_call_operand.vmem [shape: f32[1,32], index: 3, kind: input, shape index: {}]   ;;  %s4095_s4 = inlined_call_operand.vmem [shape: bf16[2,2,32,16], index: 4, kind: input, shape index: {}]   ;;  %s4096_s5 = inlined_call_operand.vmem [shape: f32[2,2,1,16], index: 5, kind: input, shape index: {}]   ;;  %s4097_s6 = inlined_call_operand.vmem [shape: bf16[2,2,32,16], index: 6, kind: input, shape index: {}]   ;;  %s4098_s7 = inlined_call_operand.vmem [shape: f32[2,2,1,16], index: 7, kind: input, shape index: {}]   ;;  %s4099_s8 = inlined_call_operand.vmem [shape: bf16[2,2,32,16], index: 8, kind: input, shape index: {}]   ;;  %s4100_s9 = inlined_call_operand.vmem [shape: f32[2,2,1,16], index: 9, kind: input, shape index: {}]   ;;  %s4101_s10 = inlined_call_operand.vmem [shape: bf16[2,2,16,32], index: 10, kind: input, shape index: {}]   ;;  %s4102_s11 = inlined_call_operand.vmem [shape: f32[2,1,32], index: 11, kind: input, shape index: {}]   ;;  %s4103_s12 = inlined_call_operand.vmem [shape: f32[2,1,32], index: 12, kind: input, shape index: {}]   ;;  %s4104_s13 = inlined_call_operand.vmem [shape: f32[2,1,32], index: 13, kind: input, shape index: {}]   ;;  %s4105_s14 = inlined_call_operand.vmem [shape: bf16[2,32,64], index: 14, kind: input, shape index: {}]   ;;  %s4106_s15 = inlined_call_operand.vmem [shape: f32[2,1,64], index: 15, kind: input, shape index: {}]   ;;  %s4107_s16 = inlined_call_operand.vmem [shape: bf16[2,64,32], index: 16, kind: input, shape index: {}]   ;;  %s4108_s17 = inlined_call_operand.vmem [shape: f32[2,1,32], index: 17, kind: input, shape index: {}]   ;;  %s4109_s18 = inlined_call_operand.vmem [shape: f32[2,1,32], index: 18, kind: input, shape index: {}]   ;;  %s4110_s19 = inlined_call_operand.vmem [shape: f32[2,1,32], index: 19, kind: input, shape index: {}]   ;;  %s4111_s20 = inlined_call_operand.vmem [shape: bf16[32,32], index: 20, kind: input, shape index: {}]   ;;  %s4112_s21 = inlined_call_operand.vmem [shape: f32[1,32], index: 21, kind: input, shape index: {}]   ;;  %s4113_s22 = inlined_call_operand.vmem [shape: bf16[32,128], index: 22, kind: input, shape index: {}]   ;;  %s4114_s23 = inlined_call_operand.vmem [shape: f32[1,128], index: 23, kind: input, shape index: {}]   ;;  %s4115_s24 = inlined_call_operand.hbm [shape: f32[2,128], index: 24, kind: output, shape index: {}]  }
   0x1   :  { %4123 = sst [smem:[#allocation5_spill]] %s4091_s0 }
   0x2   :  { %4124 = sst [smem:[#allocation6_spill]] %s4092_s1 }
   0x3   :  { %4125 = sst [smem:[#allocation7_spill]] %s4093_s2 }
   0x4   :  { %4126 = sst [smem:[#allocation8_spill]] %s4094_s3 }
   0x5   :  { %4127 = sst [smem:[#allocation9_spill]] %s4095_s4 }
   0x6   :  { %4128 = sst [smem:[#allocation10_spill]] %s4096_s5 }
   0x7   :  { %4129 = sst [smem:[#allocation11_spill]] %s4097_s6 }
   0x8   :  { %4130 = sst [smem:[#allocation12_spill]] %s4098_s7 }
   0x9   :  { %4131 = sst [smem:[#allocation13_spill]] %s4099_s8 }
   0xa   :  { %s4132_s27 = sld [smem:[#allocation5_spill]]  ;;  %vm83_vm0 = vcmask 261120  }
  0x10   :  { %v79_v0 = vld [vmem:[%s4132_s27] sm:$0xff]  ;;  %v80_v1 = vld [vmem:[%s4132_s27 + $0x8] sm:$0xff] }
  0x11   :  { %v84_v2 = vsel %vm83_vm0, %v79_v0, 0.0  ;;  %v87_v3 = vsel %vm83_vm0, %v80_v1, 0.0 }
  0x12   :  { %85 = vadd.xlane.f32.xlu0 %v84_v2 }
  0x16   :  { %88 = vadd.xlane.f32.xlu0 %v87_v3 }
  0x17   :  { %29 = vsyncpa [#allocation3], 0  ;;  %s4133_s0 = sld [smem:[#allocation9_spill]]  ;;  %s4134_s3 = sld [smem:[#allocation11_spill]]  ;;  %v3423_v16 = vmov 0.0   ;;  %vm3424_vm1 = vmmov 0  }
  0x18   :  { %3018 = vmatprep.subr.bf16.mxu0 %v3423_v16  ;;  %3026 = vmatprep.subr.bf16.mxu1 %v3423_v16  ;;  %s4135_s27 = sld [smem:[#allocation7_spill]]  ;;  %s4136_s2 = sld [smem:[#allocation8_spill]]  ;;  %vm341_vm2 = vcmask 130048   ;;  %v2746_v53 = vld [vmem:[%s4100_s9] ss:$0 sm:$0xff]  ;;  %vm464_vm3 = vcmask 1043456  }
  0x19   :  { %3022 = vmatprep.mubr.msk.bf16.mxu0 %vm3424_vm1, %v3423_v16  ;;  %3030 = vmatprep.mubr.msk.bf16.mxu1 %vm3424_vm1, %v3423_v16  ;;  %s4137_s30 = sld [smem:[#allocation13_spill]]  ;;  %s4138_s5 = sld [smem:[#allocation12_spill]]  ;;  %vm434_vm4 = vcmask 64512   ;;  %vm1254_vm5 = vcmask 523264   ;;  %vm2595_vm6 = vcmask 1041409  }
  0x1a   :  { %s4139_s28 = sld [smem:[#allocation10_spill]]  ;;  %s4140_s25 = sld [smem:[#allocation6_spill]] }
  0x1d   :  { %v3293_v14 = vld [vmem:[%s4133_s0] sm:$0xff]   ;;  %v3295_v17 = vld [vmem:[%s4133_s0 + $0x8] sm:$0xff]  }
  0x1e   :  { %v3294_v15 = vld [vmem:[%s4134_s3] sm:$0xff]   ;;  %3019 = vmatpush3.bf16.msra.mxu0 %v3293_v14  ;;  %v3296_v18 = vld [vmem:[%s4134_s3 + $0x8] sm:$0xff]  }
  0x1f   :  { %3027 = vmatpush3.bf16.msra.mxu1 %v3294_v15  ;;  %3020 = vmatprep.subr.bf16.mxu0 %v3423_v16  ;;  %v2736_v27 = vld [vmem:[%s4135_s27] ss:$0 sm:$0xff]  ;;  %v3298_v37 = vld [vmem:[%s4137_s30 + $0x8] sm:$0xff]  }
  0x20   :  { %3028 = vmatprep.subr.bf16.mxu1 %v3423_v16  ;;  %v2737_v31 = vld [vmem:[%s4136_s2] ss:$0 sm:$0xff] }
  0x21   :  { %v3297_v35 = vld [vmem:[%s4137_s30] sm:$0xff]  }
  0x22   :  { %3021 = vmatpush3.bf16.msra.mxu0 %v3295_v17  ;;  %v2742_v38 = vld [vmem:[%s4138_s5] ss:$0 sm:$0xff] }
  0x23   :  { %3029 = vmatpush3.bf16.msra.mxu1 %v3296_v18  ;;  %3034 = vmatprep.subr.bf16.mxu0 %v3423_v16  ;;  %v2738_v50 = vld [vmem:[%s4139_s28] ss:$0 sm:$0xff] }
  0x24   :  { %3042 = vmatprep.subr.bf16.mxu1 %v3423_v16 }
  0x9f   :  { %v86_v4 = vpop.xlane.xlu0 %85 }
  0xa0   :  { %v91_v5 = vmul.f32 0.03125, %v86_v4 }
  0xa2   :  { %v93_v6 = vsub.f32 %v79_v0, %v91_v5  ;;  %v3643_v5 = vld [vmem:[%s4140_s25] ss:$0 sm:$0xff] }
  0xa3   :  { %v89_v7 = vpop.xlane.xlu0 %88 }
  0xa4   :  { %v92_v8 = vmul.f32 0.03125, %v89_v7  ;;  %v95_v9 = vmul.f32 %v93_v6, %v93_v6  ;;  %v3648_v7 = vld [vmem:[%s4140_s25 + $0x1] ss:$0 sm:$0xff] }
  0xa6   :  { %v94_v10 = vsub.f32 %v80_v1, %v92_v8  ;;  %v97_v11 = vsel %vm83_vm0, %v95_v9, 0.0 }
  0xa7   :  { %98 = vadd.xlane.f32.xlu1 %v97_v11 }
  0xa8   :  { %v96_v12 = vmul.f32 %v94_v10, %v94_v10 }
  0xaa   :  { %v100_v13 = vsel %vm83_vm0, %v96_v12, 0.0 }
  0xab   :  { %101 = vadd.xlane.f32.xlu1 %v100_v13 }
 0x134   :  { %v99_v19 = vpop.xlane.xlu1 %98 }
 0x135   :  { %v103_v20 = vmul.f32 0.03125, %v99_v19 }
 0x137   :  { %v105_v21 = vadd.f32 1e-05, %v103_v20 }
 0x138   :  { %v102_v22 = vpop.xlane.xlu1 %101 }
 0x139   :  { %3337 = vrsqrt.f32 %v105_v21  ;;  %v104_v23 = vmul.f32 0.03125, %v102_v22 }
 0x13b   :  { %v106_v24 = vadd.f32 1e-05, %v104_v23 }
 0x13d   :  { %3339 = vrsqrt.f32 %v106_v24 }
 0x143   :  { %v3338_v25 = vpop.eup %3337 }
 0x144   :  { %v109_v26 = vmul.f32 %v3338_v25, %v93_v6 }
 0x146   :  { %v117_v29 = vmul.f32 %v2736_v27, %v109_v26 }
 0x147   :  { %v3340_v28 = vpop.eup %3339 }
 0x148   :  { %v110_v30 = vmul.f32 %v3340_v28, %v94_v10  ;;  %v3589_v33 = vadd.f32 %v2737_v31, %v117_v29 }
 0x14a   :  { %v118_v32 = vmul.f32 %v2736_v27, %v110_v30 }
 0x14c   :  { %v3591_v34 = vadd.f32 %v2737_v31, %v118_v32 }
 0x14e   :  { %v3598_v36 = vpack.c.bf16 %v3591_v34, %v3589_v33 }
 0x150   :  { %3023 = vmatmul.mubr.msk.bf16.vlgmr.msra.gmra.mrb[0].mxu0 %vm83_vm0, %v3598_v36  ;;  %3031 = vmatmul.mubr.msk.bf16.vlgmr.msra.gmra.mrb[0].mxu1 %vm83_vm0, %v3598_v36 }
 0x151   :  { %3035 = vmatpush3.bf16.msra.mxu0 %v3297_v35  ;;  %3038 = vmatprep.mubr.msk.bf16.mxu0 %vm3424_vm1, %v3423_v16 }
 0x152   :  { %3036 = vmatprep.subr.bf16.mxu0 %v3423_v16  ;;  %3044 = vmatprep.mubr.msk.bf16.mxu1 %vm3424_vm1, %v3423_v16 }
 0x155   :  { %3037 = vmatpush3.bf16.msra.mxu0 %v3298_v37 }
 0x156   :  { %3048 = vmatprep.subr.bf16.mxu0 %v3423_v16 }
 0x158   :  { %3039 = vmatmul.mubr.msk.bf16.vlgmr.msra.gmra.mrb[4].mxu0 %vm83_vm0, %v3598_v36 }
 0x159   :  { %3050 = vmatprep.mubr.msk.bf16.mxu0 %vm3424_vm1, %v3423_v16 }
 0x223   :  { %v190_v39 = vpop.f32.mrb[0].mxu0  ;;  %v254_v40 = vpop.f32.mrb[0].mxu1 }
 0x224   :  { %v255_v41 = vadd.f32 %v2742_v38, %v254_v40  ;;  %v3024_v42 = vpop.f32.mrb[1].mxu0  ;;  %v3032_v43 = vpop.f32.mrb[1].mxu1  ;;  %v191_v54 = vadd.f32 %v2738_v50, %v190_v39 }
 0x225   :  { %v193_v44 = vpop.f32.mrb[2].mxu0  ;;  %v257_v45 = vpop.f32.mrb[2].mxu1  ;;  %v3301_v43 = vld [vmem:[%s4133_s0 + $0x18] sm:$0xff]  }
 0x226   :  { %v327_v46 = vpack.c.bf16 %v255_v41, %v255_v41  ;;  %v258_v47 = vadd.f32 %v2742_v38, %v257_v45  ;;  %v3025_v48 = vpop.f32.mrb[3].mxu0  ;;  %v3033_v49 = vpop.f32.mrb[3].mxu1  ;;  %v194_v57 = vadd.f32 %v2738_v50, %v193_v44  ;;  %v325_v61 = vpack.c.bf16 %v191_v54, %v191_v54  ;;  %v3299_v38 = vld [vmem:[%s4133_s0 + $0x10] sm:$0xff]   ;;  %v3302_v44 = vld [vmem:[%s4134_s3 + $0x18] sm:$0xff]  }
 0x227   :  { %v3300_v41 = vld [vmem:[%s4134_s3 + $0x10] sm:$0xff]  }
 0x228   :  { %v346_v51 = vsel %vm341_vm2, %v327_v46, 0  ;;  %v328_v52 = vpack.c.bf16 %v258_v47, %v258_v47  ;;  %v326_v1 = vpack.c.bf16 %v194_v57, %v194_v57  ;;  %v3303_v45 = vld [vmem:[%s4137_s30 + $0x10] sm:$0xff]   ;;  %v3304_v46 = vld [vmem:[%s4137_s30 + $0x18] sm:$0xff]  }
 0x229   :  { %3043 = vmatpush3.bf16.xpose.msra.mxu1 %v346_v51 }
 0x22a   :  { %v392_v55 = vsel %vm341_vm2, %v328_v52, 0  ;;  %3054 = vmatprep.subr.bf16.mxu1 %v3423_v16 }
 0x22b   :  { %v318_v56 = vpop.f32.mrb[4].mxu0  ;;  %3049 = vmatpush3.bf16.xpose.msra.mxu0 %v392_v55 }
 0x22c   :  { %v319_v58 = vadd.f32 %v2746_v53, %v318_v56  ;;  %v3040_v59 = vpop.f32.mrb[5].mxu0  ;;  %3060 = vmatprep.subr.bf16.mxu0 %v3423_v16 }
 0x22d   :  { %v321_v60 = vpop.f32.mrb[6].mxu0 }
 0x22e   :  { %v459_v62 = vpack.c.bf16 %v319_v58, %v319_v58  ;;  %v322_v63 = vadd.f32 %v2746_v53, %v321_v60  ;;  %v3041_v0 = vpop.f32.mrb[7].mxu0 }
 0x230   :  { %v466_v2 = vsel %vm464_vm3, %v459_v62, 0  ;;  %v460_v3 = vpack.c.bf16 %v322_v63, %v322_v63  ;;  %3045 = vmatmul.mubr.msk.bf16.vlgmr.msra.gmra.mrb[4].mxu1 %vm341_vm2, %v325_v61 }
 0x231   :  { %3055 = vmatpush3.bf16.msra.mxu1 %v466_v2  ;;  %3056 = vmatprep.mubr.msk.bf16.mxu1 %vm3424_vm1, %v3423_v16 }
 0x232   :  { %v512_v4 = vsel %vm464_vm3, %v460_v3, 0  ;;  %3051 = vmatmul.mubr.msk.bf16.vlgmr.msra.gmra.mrb[8].mxu0 %vm341_vm2, %v326_v1  ;;  %3066 = vmatprep.subr.bf16.mxu1 %v3423_v16  ;;  %v2761_v3 = vld [vmem:[%s4139_s28 + $0x1] ss:$0 sm:$0xff] }
 0x233   :  { %3061 = vmatpush3.bf16.msra.mxu0 %v512_v4  ;;  %3062 = vmatprep.mubr.msk.bf16.mxu0 %vm3424_vm1, %v3423_v16  ;;  %v2779_v4 = vld [vmem:[%s4100_s9 + $0x1] ss:$0 sm:$0xff] }
 0x234   :  { %3074 = vmatprep.subr.bf16.mxu0 %v3423_v16 }
 0x303   :  { %v382_v6 = vpop.f32.mrb[4].mxu1 }
 0x304   :  { %v383_v8 = vadd.f32 %v3643_v5, %v382_v6  ;;  %v3046_v9 = vpop.f32.mrb[5].mxu1 }
 0x305   :  { %v385_v10 = vpop.f32.mrb[6].mxu1  ;;  %v428_v11 = vpop.f32.mrb[8].mxu0 }
 0x306   :  { %v429_v12 = vadd.f32 %v3648_v7, %v428_v11  ;;  %v3047_v13 = vpop.f32.mrb[7].mxu1  ;;  %v3052_v14 = vpop.f32.mrb[9].mxu0  ;;  %v435_v15 = vsel %vm434_vm4, %v383_v8, -inf }
 0x307   :  { %436 = vmax.xlane.f32.xlu1 %v435_v15  ;;  %v431_v17 = vpop.f32.mrb[10].mxu0 }
 0x308   :  { %v3053_v18 = vpop.f32.mrb[11].mxu0  ;;  %v438_v19 = vsel %vm434_vm4, %v429_v12, -inf }
 0x309   :  { %439 = vmax.xlane.f32.xlu0 %v438_v19 }
 0x394   :  { %v437_v20 = vpop.xlane.xlu1 %436 }
 0x395   :  { %v441_v21 = vsub.f32 %v383_v8, %v437_v20 }
 0x396   :  { %v440_v22 = vpop.xlane.xlu0 %439 }
 0x397   :  { %v443_v23 = vmul.f32 1.442695, %v441_v21  ;;  %v442_v24 = vsub.f32 %v429_v12, %v440_v22 }
 0x399   :  { %3341 = vpow2.f32 %v443_v23  ;;  %v445_v25 = vmul.f32 1.442695, %v442_v24 }
 0x39b   :  { %3343 = vpow2.f32 %v445_v25 }
 0x3a3   :  { %v3342_v26 = vpop.eup %3341 }
 0x3a4   :  { %v447_v27 = vsel %vm434_vm4, %v3342_v26, 0.0 }
 0x3a5   :  { %v3344_v28 = vpop.eup %3343  ;;  %448 = vadd.xlane.f32.xlu1 %v447_v27 }
 0x3a6   :  { %v450_v29 = vsel %vm434_vm4, %v3344_v28, 0.0 }
 0x3a7   :  { %451 = vadd.xlane.f32.xlu0 %v450_v29 }
 0x432   :  { %v449_v30 = vpop.xlane.xlu1 %448 }
 0x433   :  { %3345 = vrcp.f32 %v449_v30 }
 0x434   :  { %v452_v31 = vpop.xlane.xlu0 %451 }
 0x435   :  { %3347 = vrcp.f32 %v452_v31 }
 0x43d   :  { %v3346_v32 = vpop.eup %3345 }
 0x43e   :  { %v455_v35 = vmul.f32 %v3346_v32, %v3342_v26 }
 0x43f   :  { %v3348_v37 = vpop.eup %3347 }
 0x440   :  { %v456_v39 = vmul.f32 %v3348_v37, %v3344_v28  ;;  %v457_v40 = vpack.c.bf16 %v455_v35, %v455_v35 }
 0x442   :  { %3057 = vmatmul.mubr.msk.bf16.vlgmr.msra.gmra.mrb[8].mxu1 %vm434_vm4, %v457_v40  ;;  %v458_v42 = vpack.c.bf16 %v456_v39, %v456_v39 }
 0x443   :  { %3067 = vmatpush3.bf16.msra.mxu1 %v3299_v38  ;;  %3070 = vmatprep.mubr.msk.bf16.mxu1 %vm3424_vm1, %v3423_v16 }
 0x444   :  { %3063 = vmatmul.mubr.msk.bf16.vlgmr.msra.gmra.mrb[12].mxu0 %vm434_vm4, %v458_v42  ;;  %3068 = vmatprep.subr.bf16.mxu1 %v3423_v16 }
 0x445   :  { %3075 = vmatpush3.bf16.msra.mxu0 %v3300_v41  ;;  %3078 = vmatprep.mubr.msk.bf16.mxu0 %vm3424_vm1, %v3423_v16 }
 0x446   :  { %3076 = vmatprep.subr.bf16.mxu0 %v3423_v16 }
 0x447   :  { %3069 = vmatpush3.bf16.msra.mxu1 %v3301_v43 }
 0x448   :  { %3082 = vmatprep.subr.bf16.mxu1 %v3423_v16 }
 0x449   :  { %3077 = vmatpush3.bf16.msra.mxu0 %v3302_v44 }
 0x44a   :  { %3071 = vmatmul.mubr.msk.bf16.vlgmr.msra.gmra.mrb[12].mxu1 %vm83_vm0, %v3598_v36  ;;  %3090 = vmatprep.subr.bf16.mxu0 %v3423_v16 }
 0x44b   :  { %3083 = vmatpush3.bf16.msra.mxu1 %v3303_v45  ;;  %3086 = vmatprep.mubr.msk.bf16.mxu1 %vm3424_vm1, %v3423_v16 }
 0x44c   :  { %3079 = vmatmul.mubr.msk.bf16.vlgmr.msra.gmra.mrb[16].mxu0 %vm83_vm0, %v3598_v36  ;;  %3084 = vmatprep.subr.bf16.mxu1 %v3423_v16 }
 0x44d   :  { %3092 = vmatprep.mubr.msk.bf16.mxu0 %vm3424_vm1, %v3423_v16 }
 0x44f   :  { %3085 = vmatpush3.bf16.msra.mxu1 %v3304_v46 }
 0x450   :  { %3096 = vmatprep.subr.bf16.mxu1 %v3423_v16 }
 0x452   :  { %3087 = vmatmul.mubr.msk.bf16.vlgmr.msra.gmra.mrb[16].mxu1 %vm83_vm0, %v3598_v36  ;;  %v2770_v36 = vld [vmem:[%s4138_s5 + $0x1] ss:$0 sm:$0xff] }
 0x453   :  { %3098 = vmatprep.mubr.msk.bf16.mxu1 %vm3424_vm1, %v3423_v16 }
 0x515   :  { %v3698_v47 = vpop.f32.mrb[8].mxu1 }
 0x516   :  { %v3058_v48 = vpop.f32.mrb[9].mxu1 }
 0x517   :  { %v505_v49 = vpop.f32.mrb[10].mxu1  ;;  %v3700_v50 = vpop.f32.mrb[12].mxu0 }
 0x518   :  { %v554_v51 = vpack.c.bf16 %v3700_v50, %v3698_v47  ;;  %v3059_v52 = vpop.f32.mrb[11].mxu1  ;;  %v3064_v53 = vpop.f32.mrb[13].mxu0 }
 0x519   :  { %v551_v54 = vpop.f32.mrb[14].mxu0 }
 0x51a   :  { %v3065_v55 = vpop.f32.mrb[15].mxu0 }
 0x51d   :  { %v616_v56 = vpop.f32.mrb[12].mxu1 }
 0x51e   :  { %v3072_v57 = vpop.f32.mrb[13].mxu1  ;;  %v617_v10 = vadd.f32 %v2761_v3, %v616_v56 }
 0x51f   :  { %v619_v58 = vpop.f32.mrb[14].mxu1  ;;  %v682_v59 = vpop.f32.mrb[16].mxu0  ;;  %v3306_v57 = vld [vmem:[%s4101_s10 + $0x8] sm:$0xff]  }
 0x520   :  { %v683_v60 = vadd.f32 %v2770_v36, %v682_v59  ;;  %v3073_v61 = vpop.f32.mrb[15].mxu1  ;;  %v3080_v62 = vpop.f32.mrb[17].mxu0  ;;  %v620_v15 = vadd.f32 %v2761_v3, %v619_v58  ;;  %v755_v20 = vpack.c.bf16 %v617_v10, %v617_v10 }
 0x521   :  { %v685_v63 = vpop.f32.mrb[18].mxu0 }
 0x522   :  { %v757_v0 = vpack.c.bf16 %v683_v60, %v683_v60  ;;  %v686_v1 = vadd.f32 %v2770_v36, %v685_v63  ;;  %v3081_v2 = vpop.f32.mrb[19].mxu0  ;;  %v756_v22 = vpack.c.bf16 %v620_v15, %v620_v15  ;;  %v3305_v60 = vld [vmem:[%s4101_s10] sm:$0xff]  }
 0x524   :  { %v763_v6 = vsel %vm341_vm2, %v757_v0, 0  ;;  %v758_v8 = vpack.c.bf16 %v686_v1, %v686_v1 }
 0x525   :  { %v748_v9 = vpop.f32.mrb[16].mxu1  ;;  %3091 = vmatpush3.bf16.xpose.msra.mxu0 %v763_v6 }
 0x526   :  { %v809_v11 = vsel %vm341_vm2, %v758_v8, 0  ;;  %v749_v12 = vadd.f32 %v2779_v4, %v748_v9  ;;  %v3088_v13 = vpop.f32.mrb[17].mxu1  ;;  %3102 = vmatprep.subr.bf16.mxu0 %v3423_v16 }
 0x527   :  { %v751_v14 = vpop.f32.mrb[18].mxu1  ;;  %3097 = vmatpush3.bf16.xpose.msra.mxu1 %v809_v11  ;;  %v2793_v11 = vld [vmem:[%s4102_s11] ss:$0 sm:$0xff] }
 0x528   :  { %v875_v17 = vpack.c.bf16 %v749_v12, %v749_v12  ;;  %v752_v18 = vadd.f32 %v2779_v4, %v751_v14  ;;  %v3089_v19 = vpop.f32.mrb[19].mxu1  ;;  %3108 = vmatprep.subr.bf16.mxu1 %v3423_v16 }
 0x52a   :  { %v876_v21 = vpack.c.bf16 %v752_v18, %v752_v18  ;;  %v881_v23 = vsel %vm464_vm3, %v875_v17, 0 }
 0x52c   :  { %3093 = vmatmul.mubr.msk.bf16.vlgmr.msra.gmra.mrb[20].mxu0 %vm341_vm2, %v755_v20  ;;  %v927_v24 = vsel %vm464_vm3, %v876_v21, 0 }
 0x52d   :  { %3103 = vmatpush3.bf16.msra.mxu0 %v881_v23  ;;  %3104 = vmatprep.mubr.msk.bf16.mxu0 %vm3424_vm1, %v3423_v16 }
 0x52e   :  { %3099 = vmatmul.mubr.msk.bf16.vlgmr.msra.gmra.mrb[20].mxu1 %vm341_vm2, %v756_v22  ;;  %3114 = vmatprep.subr.bf16.mxu0 %v3423_v16 }
 0x52f   :  { %3109 = vmatpush3.bf16.msra.mxu1 %v927_v24  ;;  %3110 = vmatprep.mubr.msk.bf16.mxu1 %vm3424_vm1, %v3423_v16 }
 0x530   :  { %3120 = vmatprep.subr.bf16.mxu1 %v3423_v16 }
 0x5ff   :  { %v799_v25 = vpop.f32.mrb[20].mxu0 }
 0x600   :  { %v800_v26 = vadd.f32 %v3643_v5, %v799_v25  ;;  %v3094_v27 = vpop.f32.mrb[21].mxu0 }
 0x601   :  { %v802_v28 = vpop.f32.mrb[22].mxu0  ;;  %v845_v29 = vpop.f32.mrb[20].mxu1 }
 0x602   :  { %v846_v30 = vadd.f32 %v3648_v7, %v845_v29  ;;  %v3095_v31 = vpop.f32.mrb[23].mxu0  ;;  %v3100_v32 = vpop.f32.mrb[21].mxu1  ;;  %v851_v35 = vsel %vm434_vm4, %v800_v26, -inf }
 0x603   :  { %v848_v37 = vpop.f32.mrb[22].mxu1  ;;  %852 = vmax.xlane.f32.xlu0 %v851_v35  ;;  %v3308_v35 = vld [vmem:[%s4105_s14 + $0x8] sm:$0xff]  }
 0x604   :  { %v3101_v38 = vpop.f32.mrb[23].mxu1  ;;  %v854_v39 = vsel %vm434_vm4, %v846_v30, -inf }
 0x605   :  { %855 = vmax.xlane.f32.xlu1 %v854_v39 }
 0x690   :  { %v853_v40 = vpop.xlane.xlu0 %852 }
 0x691   :  { %v857_v41 = vsub.f32 %v800_v26, %v853_v40 }
 0x692   :  { %v856_v42 = vpop.xlane.xlu1 %855 }
 0x693   :  { %v859_v43 = vmul.f32 1.442695, %v857_v41  ;;  %v858_v44 = vsub.f32 %v846_v30, %v856_v42 }
 0x695   :  { %3349 = vpow2.f32 %v859_v43  ;;  %v861_v45 = vmul.f32 1.442695, %v858_v44  ;;  %v2794_v44 = vld [vmem:[%s4103_s12] ss:$0 sm:$0xff] }
 0x697   :  { %3351 = vpow2.f32 %v861_v45 }
 0x69f   :  { %v3350_v46 = vpop.eup %3349 }
 0x6a0   :  { %v863_v48 = vsel %vm434_vm4, %v3350_v46, 0.0 }
 0x6a1   :  { %v3352_v49 = vpop.eup %3351  ;;  %864 = vadd.xlane.f32.xlu0 %v863_v48 }
 0x6a2   :  { %v866_v52 = vsel %vm434_vm4, %v3352_v49, 0.0 }
 0x6a3   :  { %867 = vadd.xlane.f32.xlu1 %v866_v52  ;;  %v2795_v52 = vld [vmem:[%s4104_s13] ss:$0 sm:$0xff] }
 0x72e   :  { %v865_v53 = vpop.xlane.xlu0 %864 }
 0x72f   :  { %3353 = vrcp.f32 %v865_v53 }
 0x730   :  { %v868_v54 = vpop.xlane.xlu1 %867 }
 0x731   :  { %3355 = vrcp.f32 %v868_v54 }
 0x739   :  { %v3354_v55 = vpop.eup %3353 }
 0x73a   :  { %v871_v56 = vmul.f32 %v3354_v55, %v3350_v46 }
 0x73b   :  { %v3356_v36 = vpop.eup %3355 }
 0x73c   :  { %v872_v58 = vmul.f32 %v3356_v36, %v3352_v49  ;;  %v873_v59 = vpack.c.bf16 %v871_v56, %v871_v56  ;;  %v3309_v36 = vld [vmem:[%s4107_s16] sm:$0xff]  }
 0x73e   :  { %3105 = vmatmul.mubr.msk.bf16.vlgmr.msra.gmra.mrb[24].mxu0 %vm434_vm4, %v873_v59  ;;  %v874_v61 = vpack.c.bf16 %v872_v58, %v872_v58  ;;  %v3311_v58 = vld [vmem:[%s4107_s16 + $0x10] sm:$0xff]   ;;  %v3312_v59 = vld [vmem:[%s4107_s16 + $0x18] sm:$0xff]  }
 0x73f   :  { %3115 = vmatpush3.bf16.msra.mxu0 %v3306_v57  ;;  %3116 = vmatprep.mubr.msk.bf16.mxu0 %vm3424_vm1, %v3423_v16  ;;  %v3310_v57 = vld [vmem:[%s4107_s16 + $0x8] sm:$0xff]  }
 0x740   :  { %3111 = vmatmul.mubr.msk.bf16.vlgmr.msra.gmra.mrb[24].mxu1 %vm434_vm4, %v874_v61  ;;  %3126 = vmatprep.subr.bf16.mxu0 %v3423_v16 }
 0x741   :  { %3121 = vmatpush3.bf16.msra.mxu1 %v3305_v60  ;;  %3122 = vmatprep.mubr.msk.bf16.mxu1 %vm3424_vm1, %v3423_v16  ;;  %v2796_v60 = vld [vmem:[%s4106_s15] ss:$0 sm:$0xff] }
 0x742   :  { %3134 = vmatprep.subr.bf16.mxu1 %v3423_v16 }
 0x748   :  { %3123 = vmatmul.mubr.msk.bf16.vlgmr.msra.gmra.mrb[28].mxu1 %vm341_vm2, %v554_v51 }
 0x749   :  { %3142 = vmatprep.mubr.msk.bf16.mxu1 %vm3424_vm1, %v3423_v16  ;;  %3135 = vmatpush3.bf16.msra.mxu1 %v3309_v36 }
 0x74a   :  { %3136 = vmatprep.subr.bf16.mxu1 %v3423_v16 }
 0x74d   :  { %3137 = vmatpush3.bf16.msra.mxu1 %v3310_v57  ;;  %v2806_v57 = vld [vmem:[%s4109_s18] ss:$0 sm:$0xff] }
 0x74e   :  { %3138 = vmatprep.subr.bf16.mxu1 %v3423_v16 }
 0x751   :  { %3139 = vmatpush3.bf16.msra.mxu1 %v3311_v58 }
 0x752   :  { %3140 = vmatprep.subr.bf16.mxu1 %v3423_v16 }
 0x755   :  { %3141 = vmatpush3.bf16.msra.mxu1 %v3312_v59 }
 0x756   :  { %3162 = vmatprep.subr.bf16.mxu1 %v3423_v16 }
 0x811   :  { %v917_v62 = vpop.f32.mrb[24].mxu0 }
 0x812   :  { %v3106_v63 = vpop.f32.mrb[25].mxu0 }
 0x813   :  { %v920_v0 = vpop.f32.mrb[26].mxu0  ;;  %v963_v1 = vpop.f32.mrb[24].mxu1 }
 0x814   :  { %v969_v2 = vpack.c.bf16 %v963_v1, %v917_v62  ;;  %v3107_v3 = vpop.f32.mrb[27].mxu0  ;;  %v3112_v4 = vpop.f32.mrb[25].mxu1 }
 0x815   :  { %v966_v6 = vpop.f32.mrb[26].mxu1 }
 0x816   :  { %v3113_v8 = vpop.f32.mrb[27].mxu1  ;;  %3117 = vmatmul.mubr.msk.bf16.vlgmr.msra.gmra.mrb[28].mxu0 %vm341_vm2, %v969_v2 }
 0x817   :  { %3130 = vmatprep.mubr.msk.bf16.mxu0 %vm3424_vm1, %v3423_v16 }
 0x81b   :  { %v1066_v47 = vpop.f32.mrb[28].mxu1 }
 0x81c   :  { %v3124_v50 = vpop.f32.mrb[29].mxu1 }
 0x81d   :  { %v1069_v51 = vpop.f32.mrb[30].mxu1 }
 0x81e   :  { %v3125_v9 = vpop.f32.mrb[31].mxu1 }
 0x8e9   :  { %v1016_v10 = vpop.f32.mrb[28].mxu0 }
 0x8ea   :  { %v1067_v12 = vadd.f32 %v1066_v47, %v1016_v10  ;;  %v3118_v13 = vpop.f32.mrb[29].mxu0 }
 0x8eb   :  { %v1019_v14 = vpop.f32.mrb[30].mxu0 }
 0x8ec   :  { %v1080_v15 = vadd.f32 %v2793_v11, %v1067_v12  ;;  %v1070_v17 = vadd.f32 %v1069_v51, %v1019_v14  ;;  %v3119_v18 = vpop.f32.mrb[31].mxu0 }
 0x8ee   :  { %v1081_v19 = vadd.f32 %v2793_v11, %v1070_v17  ;;  %v1082_v20 = vadd.f32 %v1080_v15, %v3589_v33 }
 0x8f0   :  { %v1086_v21 = vsel %vm83_vm0, %v1082_v20, 0.0  ;;  %v1083_v22 = vadd.f32 %v1081_v19, %v3591_v34  ;;  %v3307_v34 = vld [vmem:[%s4105_s14] sm:$0xff]  }
 0x8f1   :  { %1087 = vadd.xlane.f32.xlu0 %v1086_v21  ;;  %3127 = vmatpush3.bf16.msra.mxu0 %v3307_v34 }
 0x8f2   :  { %v1089_v23 = vsel %vm83_vm0, %v1083_v22, 0.0  ;;  %3128 = vmatprep.subr.bf16.mxu0 %v3423_v16 }
 0x8f3   :  { %1090 = vadd.xlane.f32.xlu1 %v1089_v23 }
 0x8f5   :  { %3129 = vmatpush3.bf16.msra.mxu0 %v3308_v35 }
 0x8f6   :  { %3146 = vmatprep.subr.bf16.mxu0 %v3423_v16 }
 0x97e   :  { %v1088_v24 = vpop.xlane.xlu0 %1087 }
 0x97f   :  { %v1092_v25 = vmul.f32 0.03125, %v1088_v24 }
 0x980   :  { %v1091_v26 = vpop.xlane.xlu1 %1090 }
 0x981   :  { %v1094_v27 = vsub.f32 %v1082_v20, %v1092_v25  ;;  %v1093_v28 = vmul.f32 0.03125, %v1091_v26 }
 0x983   :  { %v1095_v29 = vsub.f32 %v1083_v22, %v1093_v28  ;;  %v1096_v30 = vmul.f32 %v1094_v27, %v1094_v27  ;;  %v2800_v22 = vld [vmem:[%s4108_s17] ss:$0 sm:$0xff] }
 0x985   :  { %v1098_v31 = vsel %vm83_vm0, %v1096_v30, 0.0  ;;  %v1097_v32 = vmul.f32 %v1095_v29, %v1095_v29 }
 0x986   :  { %1099 = vadd.xlane.f32.xlu0 %v1098_v31 }
 0x987   :  { %v1101_v33 = vsel %vm83_vm0, %v1097_v32, 0.0 }
 0x988   :  { %1102 = vadd.xlane.f32.xlu1 %v1101_v33 }
 0xa13   :  { %v1100_v37 = vpop.xlane.xlu0 %1099 }
 0xa14   :  { %v1104_v38 = vmul.f32 0.03125, %v1100_v37 }
 0xa15   :  { %v1103_v39 = vpop.xlane.xlu1 %1102 }
 0xa16   :  { %v1106_v40 = vadd.f32 1e-05, %v1104_v38  ;;  %v1105_v41 = vmul.f32 0.03125, %v1103_v39 }
 0xa18   :  { %3357 = vrsqrt.f32 %v1106_v40  ;;  %v1107_v42 = vadd.f32 1e-05, %v1105_v41 }
 0xa1a   :  { %3359 = vrsqrt.f32 %v1107_v42 }
 0xa22   :  { %v3358_v43 = vpop.eup %3357 }
 0xa23   :  { %v1110_v45 = vmul.f32 %v3358_v43, %v1094_v27 }
 0xa24   :  { %v3360_v46 = vpop.eup %3359 }
 0xa25   :  { %v1118_v48 = vmul.f32 %v2794_v44, %v1110_v45  ;;  %v1111_v49 = vmul.f32 %v3360_v46, %v1095_v29  ;;  %v3314_v45 = vld [vmem:[%s4137_s30 + $0x20] sm:$0xff]   ;;  %v3315_v46 = vld [vmem:[%s4133_s0 + $0x28] sm:$0xff]  }
 0xa27   :  { %v1119_v53 = vmul.f32 %v2794_v44, %v1111_v49  ;;  %v1126_v54 = vadd.f32 %v2795_v52, %v1118_v48  ;;  %v3313_v44 = vld [vmem:[%s4133_s0 + $0x20] sm:$0xff]   ;;  %v3316_v48 = vld [vmem:[%s4137_s30 + $0x28] sm:$0xff]  }
 0xa29   :  { %v1127_v55 = vadd.f32 %v2795_v52, %v1119_v53 }
 0xa2b   :  { %v1132_v56 = vpack.c.bf16 %v1127_v55, %v1126_v54 }
 0xa2d   :  { %3131 = vmatmul.mubr.msk.bf16.vlgmr.msra.gmra.mrb[32].mxu0 %vm83_vm0, %v1132_v56 }
 0xa2e   :  { %3150 = vmatprep.mubr.msk.bf16.mxu0 %vm3424_vm1, %v3423_v16  ;;  %3147 = vmatpush3.bf16.msra.mxu0 %v3313_v44 }
 0xa2f   :  { %3148 = vmatprep.subr.bf16.mxu0 %v3423_v16 }
 0xa32   :  { %3149 = vmatpush3.bf16.msra.mxu0 %v3315_v46 }
 0xa33   :  { %3154 = vmatprep.subr.bf16.mxu0 %v3423_v16 }
 0xb00   :  { %v1189_v61 = vpop.f32.mrb[32].mxu0 }
 0xb01   :  { %v1190_v62 = vadd.f32 %v2796_v60, %v1189_v61  ;;  %v3132_v63 = vpop.f32.mrb[33].mxu0 }
 0xb02   :  { %v1192_v0 = vpop.f32.mrb[34].mxu0 }
 0xb03   :  { %v1196_v1 = vmul.f32 %v1190_v62, %v1190_v62  ;;  %v1193_v2 = vadd.f32 %v2796_v60, %v1192_v0  ;;  %v3133_v3 = vpop.f32.mrb[35].mxu0 }
 0xb05   :  { %v1198_v4 = vmul.f32 %v1196_v1, %v1190_v62  ;;  %v1197_v6 = vmul.f32 %v1193_v2, %v1193_v2 }
 0xb07   :  { %v1200_v8 = vmul.f32 0.044715, %v1198_v4  ;;  %v1199_v47 = vmul.f32 %v1197_v6, %v1193_v2  ;;  %v3318_v4 = vld [vmem:[%s4134_s3 + $0x28] sm:$0xff]  }
 0xb09   :  { %v1202_v50 = vadd.f32 %v1200_v8, %v1190_v62  ;;  %v1201_v51 = vmul.f32 0.044715, %v1199_v47 }
 0xb0b   :  { %v1204_v9 = vmul.f32 0.7978846, %v1202_v50  ;;  %v1203_v10 = vadd.f32 %v1201_v51, %v1193_v2 }
 0xb0d   :  { %3361 = vtanh.f32 %v1204_v9  ;;  %v1205_v11 = vmul.f32 0.7978846, %v1203_v10 }
 0xb0f   :  { %3363 = vtanh.f32 %v1205_v11 }
 0xb17   :  { %v3362_v12 = vpop.eup %3361 }
 0xb18   :  { %v1208_v13 = vadd.f32 1.0, %v3362_v12  ;;  %v2822_v12 = vld [vmem:[%s4138_s5 + $0x2] ss:$0 sm:$0xff] }
 0xb19   :  { %v3364_v14 = vpop.eup %3363 }
 0xb1a   :  { %v1210_v15 = vmul.f32 0.5, %v1208_v13  ;;  %v1209_v17 = vadd.f32 1.0, %v3364_v14 }
 0xb1c   :  { %v1211_v18 = vmul.f32 0.5, %v1209_v17  ;;  %v1212_v19 = vmul.f32 %v1210_v15, %v1190_v62  ;;  %v2807_v62 = vld [vmem:[%s4110_s19] ss:$0 sm:$0xff]  ;;  %v2831_v17 = vld [vmem:[%s4100_s9 + $0x2] ss:$0 sm:$0xff] }
 0xb1e   :  { %v1213_v20 = vmul.f32 %v1211_v18, %v1193_v2  ;;  %v3317_v2 = vld [vmem:[%s4134_s3 + $0x20] sm:$0xff]  }
 0xb20   :  { %v1222_v21 = vpack.c.bf16 %v1213_v20, %v1212_v19 }
 0xb22   :  { %3143 = vmatmul.mubr.msk.bf16.vlgmr.msra.gmra.mrb[32].mxu1 %vm1254_vm5, %v1222_v21 }
 0xb23   :  { %3166 = vmatprep.mubr.msk.bf16.mxu1 %vm3424_vm1, %v3423_v16  ;;  %3163 = vmatpush3.bf16.msra.mxu1 %v3314_v45 }
 0xb24   :  { %3164 = vmatprep.subr.bf16.mxu1 %v3423_v16 }
 0xb27   :  { %3165 = vmatpush3.bf16.msra.mxu1 %v3316_v48 }
 0xb28   :  { %3176 = vmatprep.subr.bf16.mxu1 %v3423_v16 }
 0xbf5   :  { %v1292_v23 = vpop.f32.mrb[32].mxu1 }
 0xbf6   :  { %v1293_v24 = vadd.f32 %v2800_v22, %v1292_v23  ;;  %v3144_v25 = vpop.f32.mrb[33].mxu1 }
 0xbf7   :  { %v1295_v26 = vpop.f32.mrb[34].mxu1 }
 0xbf8   :  { %v1296_v27 = vadd.f32 %v2800_v22, %v1295_v26  ;;  %v3145_v28 = vpop.f32.mrb[35].mxu1  ;;  %v1299_v29 = vadd.f32 %v1293_v24, %v1126_v54  ;;  %v2813_v22 = vld [vmem:[%s4139_s28 + $0x2] ss:$0 sm:$0xff] }
 0xbfa   :  { %v1303_v30 = vsel %vm83_vm0, %v1299_v29, 0.0  ;;  %v1300_v31 = vadd.f32 %v1296_v27, %v1127_v55 }
 0xbfb   :  { %1304 = vadd.xlane.f32.xlu0 %v1303_v30 }
 0xbfc   :  { %v1306_v32 = vsel %vm83_vm0, %v1300_v31, 0.0 }
 0xbfd   :  { %1307 = vadd.xlane.f32.xlu1 %v1306_v32 }
 0xc88   :  { %v1305_v33 = vpop.xlane.xlu0 %1304 }
 0xc89   :  { %v1309_v34 = vmul.f32 0.03125, %v1305_v33 }
 0xc8a   :  { %v1308_v35 = vpop.xlane.xlu1 %1307 }
 0xc8b   :  { %v1311_v37 = vsub.f32 %v1299_v29, %v1309_v34  ;;  %v1310_v38 = vmul.f32 0.03125, %v1308_v35 }
 0xc8d   :  { %v1312_v39 = vsub.f32 %v1300_v31, %v1310_v38  ;;  %v1313_v40 = vmul.f32 %v1311_v37, %v1311_v37 }
 0xc8f   :  { %v1315_v41 = vsel %vm83_vm0, %v1313_v40, 0.0  ;;  %v1314_v42 = vmul.f32 %v1312_v39, %v1312_v39 }
 0xc90   :  { %1316 = vadd.xlane.f32.xlu0 %v1315_v41 }
 0xc91   :  { %v1318_v43 = vsel %vm83_vm0, %v1314_v42, 0.0 }
 0xc92   :  { %1319 = vadd.xlane.f32.xlu1 %v1318_v43 }
 0xd1d   :  { %v1317_v49 = vpop.xlane.xlu0 %1316 }
 0xd1e   :  { %v1321_v52 = vmul.f32 0.03125, %v1317_v49 }
 0xd1f   :  { %v1320_v53 = vpop.xlane.xlu1 %1319 }
 0xd20   :  { %v1323_v54 = vadd.f32 1e-05, %v1321_v52  ;;  %v1322_v55 = vmul.f32 0.03125, %v1320_v53 }
 0xd22   :  { %3365 = vrsqrt.f32 %v1323_v54  ;;  %v1324_v56 = vadd.f32 1e-05, %v1322_v55 }
 0xd24   :  { %3367 = vrsqrt.f32 %v1324_v56 }
 0xd2c   :  { %v3366_v36 = vpop.eup %3365 }
 0xd2d   :  { %v1327_v58 = vmul.f32 %v3366_v36, %v1311_v37 }
 0xd2e   :  { %v3368_v59 = vpop.eup %3367 }
 0xd2f   :  { %v1335_v60 = vmul.f32 %v2806_v57, %v1327_v58  ;;  %v1328_v61 = vmul.f32 %v3368_v59, %v1312_v39 }
 0xd31   :  { %v1336_v63 = vmul.f32 %v2806_v57, %v1328_v61  ;;  %v3833_v0 = vadd.f32 %v2807_v62, %v1335_v60 }
 0xd33   :  { %v3835_v1 = vadd.f32 %v2807_v62, %v1336_v63 }
 0xd35   :  { %v3842_v3 = vpack.c.bf16 %v3835_v1, %v3833_v0 }
 0xd37   :  { %3151 = vmatmul.mubr.msk.bf16.vlgmr.msra.gmra.mrb[36].mxu0 %vm83_vm0, %v3842_v3  ;;  %3167 = vmatmul.mubr.msk.bf16.vlgmr.msra.gmra.mrb[36].mxu1 %vm83_vm0, %v3842_v3 }
 0xd38   :  { %3155 = vmatpush3.bf16.msra.mxu0 %v3317_v2  ;;  %3158 = vmatprep.mubr.msk.bf16.mxu0 %vm3424_vm1, %v3423_v16  ;;  %v3319_v2 = vld [vmem:[%s4133_s0 + $0x30] sm:$0xff]  }
 0xd39   :  { %3156 = vmatprep.subr.bf16.mxu0 %v3423_v16  ;;  %3178 = vmatprep.mubr.msk.bf16.mxu1 %vm3424_vm1, %v3423_v16 }
 0xd3c   :  { %3157 = vmatpush3.bf16.msra.mxu0 %v3318_v4 }
 0xd3d   :  { %3170 = vmatprep.subr.bf16.mxu0 %v3423_v16 }
 0xd3f   :  { %3159 = vmatmul.mubr.msk.bf16.vlgmr.msra.gmra.mrb[40].mxu0 %vm83_vm0, %v3842_v3 }
 0xd40   :  { %3172 = vmatprep.mubr.msk.bf16.mxu0 %vm3424_vm1, %v3423_v16 }
 0xe0a   :  { %v1408_v6 = vpop.f32.mrb[36].mxu0  ;;  %v1540_v8 = vpop.f32.mrb[36].mxu1 }
 0xe0b   :  { %v3152_v47 = vpop.f32.mrb[37].mxu0  ;;  %v3168_v50 = vpop.f32.mrb[37].mxu1  ;;  %v1541_v23 = vadd.f32 %v2831_v17, %v1540_v8  ;;  %v1409_v26 = vadd.f32 %v2813_v22, %v1408_v6  ;;  %v3320_v8 = vld [vmem:[%s4134_s3 + $0x30] sm:$0xff]  }
 0xe0c   :  { %v1411_v51 = vpop.f32.mrb[38].mxu0  ;;  %v1543_v9 = vpop.f32.mrb[38].mxu1  ;;  %v3321_v50 = vld [vmem:[%s4133_s0 + $0x38] sm:$0xff]  }
 0xe0d   :  { %v3153_v10 = vpop.f32.mrb[39].mxu0  ;;  %v3169_v11 = vpop.f32.mrb[39].mxu1  ;;  %v1544_v27 = vadd.f32 %v2831_v17, %v1543_v9  ;;  %v1667_v29 = vpack.c.bf16 %v1541_v23, %v1541_v23  ;;  %v1412_v30 = vadd.f32 %v2813_v22, %v1411_v51  ;;  %v1547_v31 = vpack.c.bf16 %v1409_v26, %v1409_v26  ;;  %v3322_v51 = vld [vmem:[%s4134_s3 + $0x38] sm:$0xff]   ;;  %v3323_v9 = vld [vmem:[%s4137_s30 + $0x30] sm:$0xff]  }
 0xe0e   :  { %v3324_v10 = vld [vmem:[%s4137_s30 + $0x38] sm:$0xff]  }
 0xe0f   :  { %v1668_v32 = vpack.c.bf16 %v1544_v27, %v1544_v27  ;;  %v1673_v33 = vsel %vm464_vm3, %v1667_v29, 0  ;;  %v1548_v34 = vpack.c.bf16 %v1412_v30, %v1412_v30 }
 0xe11   :  { %v1719_v35 = vsel %vm464_vm3, %v1668_v32, 0  ;;  %v2846_v32 = vld [vmem:[%s4139_s28 + $0x3] ss:$0 sm:$0xff] }
 0xe12   :  { %v1474_v13 = vpop.f32.mrb[40].mxu0 }
 0xe13   :  { %v1475_v14 = vadd.f32 %v2822_v12, %v1474_v13  ;;  %v3160_v15 = vpop.f32.mrb[41].mxu0 }
 0xe14   :  { %v1477_v18 = vpop.f32.mrb[42].mxu0 }
 0xe15   :  { %v1549_v19 = vpack.c.bf16 %v1475_v14, %v1475_v14  ;;  %v1478_v20 = vadd.f32 %v2822_v12, %v1477_v18  ;;  %v3161_v21 = vpop.f32.mrb[43].mxu0 }
 0xe17   :  { %v1555_v24 = vsel %vm341_vm2, %v1549_v19, 0  ;;  %v1550_v25 = vpack.c.bf16 %v1478_v20, %v1478_v20 }
 0xe18   :  { %3171 = vmatpush3.bf16.xpose.msra.mxu0 %v1555_v24 }
 0xe19   :  { %v1601_v28 = vsel %vm341_vm2, %v1550_v25, 0  ;;  %3182 = vmatprep.subr.bf16.mxu0 %v3423_v16 }
 0xe1a   :  { %3177 = vmatpush3.bf16.xpose.msra.mxu1 %v1601_v28 }
 0xe1b   :  { %3188 = vmatprep.subr.bf16.mxu1 %v3423_v16 }
 0xe1f   :  { %3173 = vmatmul.mubr.msk.bf16.vlgmr.msra.gmra.mrb[44].mxu0 %vm341_vm2, %v1547_v31 }
 0xe20   :  { %3183 = vmatpush3.bf16.msra.mxu0 %v1673_v33  ;;  %3184 = vmatprep.mubr.msk.bf16.mxu0 %vm3424_vm1, %v3423_v16  ;;  %v2864_v33 = vld [vmem:[%s4100_s9 + $0x3] ss:$0 sm:$0xff]  ;;  %s3425_s9 = smov [#allocation2]  }
 0xe21   :  { %3179 = vmatmul.mubr.msk.bf16.vlgmr.msra.gmra.mrb[40].mxu1 %vm341_vm2, %v1548_v34  ;;  %3194 = vmatprep.subr.bf16.mxu0 %v3423_v16 }
 0xe22   :  { %3189 = vmatpush3.bf16.msra.mxu1 %v1719_v35  ;;  %3190 = vmatprep.mubr.msk.bf16.mxu1 %vm3424_vm1, %v3423_v16 }
 0xe23   :  { %3202 = vmatprep.subr.bf16.mxu1 %v3423_v16 }
 0xef2   :  { %v1591_v37 = vpop.f32.mrb[44].mxu0 }
 0xef3   :  { %v1592_v38 = vadd.f32 %v3643_v5, %v1591_v37  ;;  %v3174_v39 = vpop.f32.mrb[45].mxu0 }
 0xef4   :  { %v1594_v40 = vpop.f32.mrb[46].mxu0  ;;  %v1637_v41 = vpop.f32.mrb[40].mxu1 }
 0xef5   :  { %v1638_v42 = vadd.f32 %v3648_v7, %v1637_v41  ;;  %v3175_v43 = vpop.f32.mrb[47].mxu0  ;;  %v3180_v44 = vpop.f32.mrb[41].mxu1  ;;  %v1643_v45 = vsel %vm434_vm4, %v1592_v38, -inf }
 0xef6   :  { %v1640_v46 = vpop.f32.mrb[42].mxu1  ;;  %1644 = vmax.xlane.f32.xlu1 %v1643_v45 }
 0xef7   :  { %v3181_v48 = vpop.f32.mrb[43].mxu1  ;;  %v1646_v49 = vsel %vm434_vm4, %v1638_v42, -inf }
 0xef8   :  { %1647 = vmax.xlane.f32.xlu0 %v1646_v49 }
 0xf83   :  { %v1645_v52 = vpop.xlane.xlu1 %1644 }
 0xf84   :  { %v1649_v53 = vsub.f32 %v1592_v38, %v1645_v52 }
 0xf85   :  { %v1648_v54 = vpop.xlane.xlu0 %1647 }
 0xf86   :  { %v1651_v55 = vmul.f32 1.442695, %v1649_v53  ;;  %v1650_v5 = vsub.f32 %v1638_v42, %v1648_v54 }
 0xf88   :  { %3369 = vpow2.f32 %v1651_v55  ;;  %v1653_v56 = vmul.f32 1.442695, %v1650_v5  ;;  %v3397_v5 = vld [vmem:[%s4140_s25] ss:$0 sm:$0xff] }
 0xf8a   :  { %3371 = vpow2.f32 %v1653_v56 }
 0xf92   :  { %v3370_v36 = vpop.eup %3369 }
 0xf93   :  { %v1655_v7 = vsel %vm434_vm4, %v3370_v36, 0.0 }
 0xf94   :  { %v3372_v57 = vpop.eup %3371  ;;  %1656 = vadd.xlane.f32.xlu1 %v1655_v7 }
 0xf95   :  { %v1658_v58 = vsel %vm434_vm4, %v3372_v57, 0.0 }
 0xf96   :  { %1659 = vadd.xlane.f32.xlu0 %v1658_v58  ;;  %v3398_v58 = vld [vmem:[%s4140_s25 + $0x1] ss:$0 sm:$0xff] }
0x1021   :  { %v1657_v59 = vpop.xlane.xlu1 %1656 }
0x1022   :  { %3373 = vrcp.f32 %v1657_v59 }
0x1023   :  { %v1660_v60 = vpop.xlane.xlu0 %1659 }
0x1024   :  { %3375 = vrcp.f32 %v1660_v60 }
0x102c   :  { %v3374_v61 = vpop.eup %3373 }
0x102d   :  { %v1663_v62 = vmul.f32 %v3374_v61, %v3370_v36 }
0x102e   :  { %v3376_v63 = vpop.eup %3375 }
0x102f   :  { %v1664_v4 = vmul.f32 %v3376_v63, %v3372_v57  ;;  %v1665_v6 = vpack.c.bf16 %v1663_v62, %v1663_v62 }
0x1031   :  { %3185 = vmatmul.mubr.msk.bf16.vlgmr.msra.gmra.mrb[48].mxu0 %vm434_vm4, %v1665_v6  ;;  %v1666_v47 = vpack.c.bf16 %v1664_v4, %v1664_v4 }
0x1032   :  { %3195 = vmatpush3.bf16.msra.mxu0 %v3319_v2  ;;  %3198 = vmatprep.mubr.msk.bf16.mxu0 %vm3424_vm1, %v3423_v16 }
0x1033   :  { %3191 = vmatmul.mubr.msk.bf16.vlgmr.msra.gmra.mrb[44].mxu1 %vm434_vm4, %v1666_v47  ;;  %3196 = vmatprep.subr.bf16.mxu0 %v3423_v16 }
0x1034   :  { %3203 = vmatpush3.bf16.msra.mxu1 %v3320_v8  ;;  %3206 = vmatprep.mubr.msk.bf16.mxu1 %vm3424_vm1, %v3423_v16 }
0x1035   :  { %3204 = vmatprep.subr.bf16.mxu1 %v3423_v16 }
0x1036   :  { %3197 = vmatpush3.bf16.msra.mxu0 %v3321_v50 }
0x1037   :  { %3210 = vmatprep.subr.bf16.mxu0 %v3423_v16 }
0x1038   :  { %3205 = vmatpush3.bf16.msra.mxu1 %v3322_v51 }
0x1039   :  { %3199 = vmatmul.mubr.msk.bf16.vlgmr.msra.gmra.mrb[52].mxu0 %vm83_vm0, %v3842_v3  ;;  %3218 = vmatprep.subr.bf16.mxu1 %v3423_v16 }
0x103a   :  { %3211 = vmatpush3.bf16.msra.mxu0 %v3323_v9  ;;  %3214 = vmatprep.mubr.msk.bf16.mxu0 %vm3424_vm1, %v3423_v16 }
0x103b   :  { %3207 = vmatmul.mubr.msk.bf16.vlgmr.msra.gmra.mrb[48].mxu1 %vm83_vm0, %v3842_v3  ;;  %3212 = vmatprep.subr.bf16.mxu0 %v3423_v16 }
0x103c   :  { %3220 = vmatprep.mubr.msk.bf16.mxu1 %vm3424_vm1, %v3423_v16 }
0x103e   :  { %3213 = vmatpush3.bf16.msra.mxu0 %v3324_v10 }
0x103f   :  { %3224 = vmatprep.subr.bf16.mxu0 %v3423_v16 }
0x1041   :  { %3215 = vmatmul.mubr.msk.bf16.vlgmr.msra.gmra.mrb[56].mxu0 %vm83_vm0, %v3842_v3  ;;  %v2855_v3 = vld [vmem:[%s4138_s5 + $0x3] ss:$0 sm:$0xff] }
0x1042   :  { %3226 = vmatprep.mubr.msk.bf16.mxu0 %vm3424_vm1, %v3423_v16 }
0x1104   :  { %v3932_v11 = vpop.f32.mrb[48].mxu0 }
0x1105   :  { %v3186_v12 = vpop.f32.mrb[49].mxu0 }
0x1106   :  { %v1712_v13 = vpop.f32.mrb[50].mxu0  ;;  %v3934_v14 = vpop.f32.mrb[44].mxu1 }
0x1107   :  { %v1761_v15 = vpack.c.bf16 %v3934_v14, %v3932_v11  ;;  %v3187_v17 = vpop.f32.mrb[51].mxu0  ;;  %v3192_v18 = vpop.f32.mrb[45].mxu1 }
0x1108   :  { %v1758_v19 = vpop.f32.mrb[46].mxu1 }
0x1109   :  { %v3193_v20 = vpop.f32.mrb[47].mxu1 }
0x110c   :  { %v1824_v21 = vpop.f32.mrb[52].mxu0 }
0x110d   :  { %v3200_v22 = vpop.f32.mrb[53].mxu0  ;;  %v1825_v38 = vadd.f32 %v2846_v32, %v1824_v21 }
0x110e   :  { %v1827_v23 = vpop.f32.mrb[54].mxu0  ;;  %v1890_v24 = vpop.f32.mrb[48].mxu1  ;;  %v3326_v22 = vld [vmem:[%s4101_s10 + $0x18] sm:$0xff]  }
0x110f   :  { %v1891_v25 = vadd.f32 %v2855_v3, %v1890_v24  ;;  %v3201_v26 = vpop.f32.mrb[55].mxu0  ;;  %v3208_v27 = vpop.f32.mrb[49].mxu1  ;;  %v1828_v43 = vadd.f32 %v2846_v32, %v1827_v23  ;;  %v1963_v48 = vpack.c.bf16 %v1825_v38, %v1825_v38 }
0x1110   :  { %v1893_v28 = vpop.f32.mrb[50].mxu1 }
0x1111   :  { %v1965_v29 = vpack.c.bf16 %v1891_v25, %v1891_v25  ;;  %v1894_v30 = vadd.f32 %v2855_v3, %v1893_v28  ;;  %v3209_v31 = vpop.f32.mrb[51].mxu1  ;;  %v1964_v52 = vpack.c.bf16 %v1828_v43, %v1828_v43  ;;  %v3325_v25 = vld [vmem:[%s4101_s10 + $0x10] sm:$0xff]  }
0x1113   :  { %v1971_v34 = vsel %vm341_vm2, %v1965_v29, 0  ;;  %v1966_v35 = vpack.c.bf16 %v1894_v30, %v1894_v30 }
0x1114   :  { %v1956_v37 = vpop.f32.mrb[56].mxu0  ;;  %3219 = vmatpush3.bf16.xpose.msra.mxu1 %v1971_v34 }
0x1115   :  { %v2017_v39 = vsel %vm341_vm2, %v1966_v35, 0  ;;  %v1957_v40 = vadd.f32 %v2864_v33, %v1956_v37  ;;  %v3216_v41 = vpop.f32.mrb[57].mxu0  ;;  %3230 = vmatprep.subr.bf16.mxu1 %v3423_v16 }
0x1116   :  { %v1959_v42 = vpop.f32.mrb[58].mxu0  ;;  %3225 = vmatpush3.bf16.xpose.msra.mxu0 %v2017_v39  ;;  %v2879_v39 = vld [vmem:[%s4102_s11 + $0x1] ss:$0 sm:$0xff] }
0x1117   :  { %v2083_v44 = vpack.c.bf16 %v1957_v40, %v1957_v40  ;;  %v1960_v45 = vadd.f32 %v2864_v33, %v1959_v42  ;;  %v3217_v46 = vpop.f32.mrb[59].mxu0  ;;  %3236 = vmatprep.subr.bf16.mxu0 %v3423_v16 }
0x1119   :  { %v2084_v49 = vpack.c.bf16 %v1960_v45, %v1960_v45  ;;  %v2089_v53 = vsel %vm464_vm3, %v2083_v44, 0 }
0x111b   :  { %3221 = vmatmul.mubr.msk.bf16.vlgmr.msra.gmra.mrb[52].mxu1 %vm341_vm2, %v1963_v48  ;;  %v2135_v54 = vsel %vm464_vm3, %v2084_v49, 0 }
0x111c   :  { %3231 = vmatpush3.bf16.msra.mxu1 %v2089_v53  ;;  %3232 = vmatprep.mubr.msk.bf16.mxu1 %vm3424_vm1, %v3423_v16 }
0x111d   :  { %3227 = vmatmul.mubr.msk.bf16.vlgmr.msra.gmra.mrb[60].mxu0 %vm341_vm2, %v1964_v52  ;;  %3242 = vmatprep.subr.bf16.mxu1 %v3423_v16 }
0x111e   :  { %3237 = vmatpush3.bf16.msra.mxu0 %v2135_v54  ;;  %3238 = vmatprep.mubr.msk.bf16.mxu0 %vm3424_vm1, %v3423_v16 }
0x111f   :  { %3248 = vmatprep.subr.bf16.mxu0 %v3423_v16 }
0x11ee   :  { %v2007_v55 = vpop.f32.mrb[52].mxu1 }
0x11ef   :  { %v2008_v56 = vadd.f32 %v3397_v5, %v2007_v55  ;;  %v3222_v36 = vpop.f32.mrb[53].mxu1 }
0x11f0   :  { %v2010_v7 = vpop.f32.mrb[54].mxu1  ;;  %v2053_v57 = vpop.f32.mrb[60].mxu0 }
0x11f1   :  { %v2054_v59 = vadd.f32 %v3398_v58, %v2053_v57  ;;  %v3223_v60 = vpop.f32.mrb[55].mxu1  ;;  %v3228_v61 = vpop.f32.mrb[61].mxu0  ;;  %v2059_v62 = vsel %vm434_vm4, %v2008_v56, -inf }
0x11f2   :  { %2060 = vmax.xlane.f32.xlu0 %v2059_v62  ;;  %v2056_v63 = vpop.f32.mrb[62].mxu0  ;;  %v3328_v60 = vld [vmem:[%s4105_s14 + $0x18] sm:$0xff]  }
0x11f3   :  { %v3229_v2 = vpop.f32.mrb[63].mxu0  ;;  %v2062_v4 = vsel %vm434_vm4, %v2054_v59, -inf }
0x11f4   :  { %2063 = vmax.xlane.f32.xlu1 %v2062_v4 }
0x127f   :  { %v2061_v6 = vpop.xlane.xlu0 %2060 }
0x1280   :  { %v2065_v8 = vsub.f32 %v2008_v56, %v2061_v6 }
0x1281   :  { %v2064_v47 = vpop.xlane.xlu1 %2063 }
0x1282   :  { %v2067_v50 = vmul.f32 1.442695, %v2065_v8  ;;  %v2066_v51 = vsub.f32 %v2054_v59, %v2064_v47  ;;  %v2882_v47 = vld [vmem:[%s4103_s12 + $0x1] ss:$0 sm:$0xff] }
0x1284   :  { %3377 = vpow2.f32 %v2067_v50  ;;  %v2069_v9 = vmul.f32 1.442695, %v2066_v51 }
0x1286   :  { %3379 = vpow2.f32 %v2069_v9 }
0x128e   :  { %v3378_v10 = vpop.eup %3377 }
0x128f   :  { %v2071_v12 = vsel %vm434_vm4, %v3378_v10, 0.0 }
0x1290   :  { %v3380_v13 = vpop.eup %3379  ;;  %2072 = vadd.xlane.f32.xlu0 %v2071_v12  ;;  %v2883_v12 = vld [vmem:[%s4104_s13 + $0x1] ss:$0 sm:$0xff] }
0x1291   :  { %v2074_v17 = vsel %vm434_vm4, %v3380_v13, 0.0 }
0x1292   :  { %2075 = vadd.xlane.f32.xlu1 %v2074_v17 }
0x131d   :  { %v2073_v18 = vpop.xlane.xlu0 %2072 }
0x131e   :  { %3381 = vrcp.f32 %v2073_v18 }
0x131f   :  { %v2076_v19 = vpop.xlane.xlu1 %2075 }
0x1320   :  { %3383 = vrcp.f32 %v2076_v19 }
0x1328   :  { %v3382_v20 = vpop.eup %3381 }
0x1329   :  { %v2079_v21 = vmul.f32 %v3382_v20, %v3378_v10  ;;  %v3329_v20 = vld [vmem:[%s4107_s16 + $0x20] sm:$0xff]  }
0x132a   :  { %v3384_v3 = vpop.eup %3383 }
0x132b   :  { %v2080_v23 = vmul.f32 %v3384_v3, %v3380_v13  ;;  %v2081_v24 = vpack.c.bf16 %v2079_v21, %v2079_v21  ;;  %v3330_v21 = vld [vmem:[%s4107_s16 + $0x28] sm:$0xff]   ;;  %v3331_v3 = vld [vmem:[%s4107_s16 + $0x30] sm:$0xff]  }
0x132d   :  { %3233 = vmatmul.mubr.msk.bf16.vlgmr.msra.gmra.mrb[56].mxu1 %vm434_vm4, %v2081_v24  ;;  %v2082_v26 = vpack.c.bf16 %v2080_v23, %v2080_v23  ;;  %v2889_v23 = vld [vmem:[%s4106_s15 + $0x1] ss:$0 sm:$0xff] }
0x132e   :  { %3243 = vmatpush3.bf16.msra.mxu1 %v3326_v22  ;;  %3244 = vmatprep.mubr.msk.bf16.mxu1 %vm3424_vm1, %v3423_v16  ;;  %v3332_v22 = vld [vmem:[%s4107_s16 + $0x38] sm:$0xff]  }
0x132f   :  { %3239 = vmatmul.mubr.msk.bf16.vlgmr.msra.gmra.mrb[64].mxu0 %vm434_vm4, %v2082_v26  ;;  %3254 = vmatprep.subr.bf16.mxu1 %v3423_v16 }
0x1330   :  { %3249 = vmatpush3.bf16.msra.mxu0 %v3325_v25  ;;  %3250 = vmatprep.mubr.msk.bf16.mxu0 %vm3424_vm1, %v3423_v16 }
0x1331   :  { %3262 = vmatprep.subr.bf16.mxu0 %v3423_v16 }
0x1337   :  { %3251 = vmatmul.mubr.msk.bf16.vlgmr.msra.gmra.mrb[68].mxu0 %vm341_vm2, %v1761_v15 }
0x1338   :  { %3270 = vmatprep.mubr.msk.bf16.mxu0 %vm3424_vm1, %v3423_v16  ;;  %3263 = vmatpush3.bf16.msra.mxu0 %v3329_v20  ;;  %v2911_v20 = vld [vmem:[%s4110_s19 + $0x1] ss:$0 sm:$0xff] }
0x1339   :  { %3264 = vmatprep.subr.bf16.mxu0 %v3423_v16 }
0x133c   :  { %3265 = vmatpush3.bf16.msra.mxu0 %v3330_v21 }
0x133d   :  { %3266 = vmatprep.subr.bf16.mxu0 %v3423_v16 }
0x1340   :  { %3267 = vmatpush3.bf16.msra.mxu0 %v3331_v3 }
0x1341   :  { %3268 = vmatprep.subr.bf16.mxu0 %v3423_v16 }
0x1344   :  { %3269 = vmatpush3.bf16.msra.mxu0 %v3332_v22 }
0x1400   :  { %v2125_v27 = vpop.f32.mrb[56].mxu1 }
0x1401   :  { %v3234_v28 = vpop.f32.mrb[57].mxu1 }
0x1402   :  { %v2128_v29 = vpop.f32.mrb[58].mxu1  ;;  %v2171_v30 = vpop.f32.mrb[64].mxu0 }
0x1403   :  { %v2177_v31 = vpack.c.bf16 %v2171_v30, %v2125_v27  ;;  %v3235_v32 = vpop.f32.mrb[59].mxu1  ;;  %v3240_v33 = vpop.f32.mrb[65].mxu0 }
0x1404   :  { %v2174_v34 = vpop.f32.mrb[66].mxu0 }
0x1405   :  { %v3241_v35 = vpop.f32.mrb[67].mxu0  ;;  %3245 = vmatmul.mubr.msk.bf16.vlgmr.msra.gmra.mrb[60].mxu1 %vm341_vm2, %v2177_v31 }
0x1406   :  { %3258 = vmatprep.mubr.msk.bf16.mxu1 %vm3424_vm1, %v3423_v16 }
0x140a   :  { %v2274_v11 = vpop.f32.mrb[68].mxu0 }
0x140b   :  { %v3252_v14 = vpop.f32.mrb[69].mxu0 }
0x140c   :  { %v2277_v15 = vpop.f32.mrb[70].mxu0 }
0x140d   :  { %v3253_v37 = vpop.f32.mrb[71].mxu0 }
0x14d8   :  { %v2224_v38 = vpop.f32.mrb[60].mxu1 }
0x14d9   :  { %v2275_v40 = vadd.f32 %v2274_v11, %v2224_v38  ;;  %v3246_v41 = vpop.f32.mrb[61].mxu1 }
0x14da   :  { %v2227_v42 = vpop.f32.mrb[62].mxu1 }
0x14db   :  { %v2289_v43 = vadd.f32 %v2879_v39, %v2275_v40  ;;  %v2278_v44 = vadd.f32 %v2277_v15, %v2227_v42  ;;  %v3247_v45 = vpop.f32.mrb[63].mxu1 }
0x14dd   :  { %v2290_v46 = vadd.f32 %v2879_v39, %v2278_v44  ;;  %v2291_v48 = vadd.f32 %v2289_v43, %v3833_v0 }
0x14df   :  { %v2297_v49 = vsel %vm83_vm0, %v2291_v48, 0.0  ;;  %v2292_v52 = vadd.f32 %v2290_v46, %v3835_v1  ;;  %v3327_v1 = vld [vmem:[%s4105_s14 + $0x10] sm:$0xff]  }
0x14e0   :  { %2298 = vadd.xlane.f32.xlu0 %v2297_v49  ;;  %3255 = vmatpush3.bf16.msra.mxu1 %v3327_v1 }
0x14e1   :  { %v2300_v53 = vsel %vm83_vm0, %v2292_v52, 0.0  ;;  %3256 = vmatprep.subr.bf16.mxu1 %v3423_v16 }
0x14e2   :  { %2301 = vadd.xlane.f32.xlu1 %v2300_v53 }
0x14e4   :  { %3257 = vmatpush3.bf16.msra.mxu1 %v3328_v60 }
0x14e5   :  { %3274 = vmatprep.subr.bf16.mxu1 %v3423_v16 }
0x156d   :  { %v2299_v54 = vpop.xlane.xlu0 %2298 }
0x156e   :  { %v2303_v55 = vmul.f32 0.03125, %v2299_v54 }
0x156f   :  { %v2302_v5 = vpop.xlane.xlu1 %2301 }
0x1570   :  { %v2305_v56 = vsub.f32 %v2291_v48, %v2303_v55  ;;  %v2304_v36 = vmul.f32 0.03125, %v2302_v5  ;;  %v2902_v48 = vld [vmem:[%s4108_s17 + $0x1] ss:$0 sm:$0xff] }
0x1572   :  { %v2306_v7 = vsub.f32 %v2292_v52, %v2304_v36  ;;  %v2307_v57 = vmul.f32 %v2305_v56, %v2305_v56 }
0x1574   :  { %v2309_v58 = vsel %vm83_vm0, %v2307_v57, 0.0  ;;  %v2308_v59 = vmul.f32 %v2306_v7, %v2306_v7 }
0x1575   :  { %2310 = vadd.xlane.f32.xlu0 %v2309_v58 }
0x1576   :  { %v2312_v0 = vsel %vm83_vm0, %v2308_v59, 0.0 }
0x1577   :  { %2313 = vadd.xlane.f32.xlu1 %v2312_v0 }
0x1602   :  { %v2311_v61 = vpop.xlane.xlu0 %2310 }
0x1603   :  { %v2315_v62 = vmul.f32 0.03125, %v2311_v61 }
0x1604   :  { %v2314_v63 = vpop.xlane.xlu1 %2313 }
0x1605   :  { %v2317_v2 = vadd.f32 1e-05, %v2315_v62  ;;  %v2316_v4 = vmul.f32 0.03125, %v2314_v63 }
0x1607   :  { %3385 = vrsqrt.f32 %v2317_v2  ;;  %v2318_v6 = vadd.f32 1e-05, %v2316_v4 }
0x1609   :  { %3387 = vrsqrt.f32 %v2318_v6  ;;  %v3333_v6 = vld [vmem:[%s4111_s20] sm:$0xff]  }
0x1611   :  { %v3386_v8 = vpop.eup %3385 }
0x1612   :  { %v2321_v50 = vmul.f32 %v3386_v8, %v2305_v56  ;;  %v3334_v8 = vld [vmem:[%s4111_s20 + $0x8] sm:$0xff]  }
0x1613   :  { %v3388_v51 = vpop.eup %3387 }
0x1614   :  { %v2329_v9 = vmul.f32 %v2882_v47, %v2321_v50  ;;  %v2322_v10 = vmul.f32 %v3388_v51, %v2306_v7 }
0x1616   :  { %v2330_v13 = vmul.f32 %v2882_v47, %v2322_v10  ;;  %v2337_v17 = vadd.f32 %v2883_v12, %v2329_v9 }
0x1618   :  { %v2338_v18 = vadd.f32 %v2883_v12, %v2330_v13 }
0x161a   :  { %v2344_v19 = vpack.c.bf16 %v2338_v18, %v2337_v17 }
0x161c   :  { %3259 = vmatmul.mubr.msk.bf16.vlgmr.msra.gmra.mrb[64].mxu1 %vm83_vm0, %v2344_v19 }
0x161d   :  { %3278 = vmatprep.mubr.msk.bf16.mxu1 %vm3424_vm1, %v3423_v16  ;;  %3275 = vmatpush3.bf16.msra.mxu1 %v3333_v6 }
0x161e   :  { %3276 = vmatprep.subr.bf16.mxu1 %v3423_v16 }
0x1621   :  { %3277 = vmatpush3.bf16.msra.mxu1 %v3334_v8 }
0x1622   :  { %3282 = vmatprep.subr.bf16.mxu1 %v3423_v16 }
0x16ef   :  { %v2402_v24 = vpop.f32.mrb[64].mxu1 }
0x16f0   :  { %v2403_v25 = vadd.f32 %v2889_v23, %v2402_v24  ;;  %v3260_v26 = vpop.f32.mrb[65].mxu1 }
0x16f1   :  { %v2405_v27 = vpop.f32.mrb[66].mxu1 }
0x16f2   :  { %v2409_v28 = vmul.f32 %v2403_v25, %v2403_v25  ;;  %v2406_v29 = vadd.f32 %v2889_v23, %v2405_v27  ;;  %v3261_v30 = vpop.f32.mrb[67].mxu1 }
0x16f4   :  { %v2411_v31 = vmul.f32 %v2409_v28, %v2403_v25  ;;  %v2410_v32 = vmul.f32 %v2406_v29, %v2406_v29 }
0x16f6   :  { %v2413_v33 = vmul.f32 0.044715, %v2411_v31  ;;  %v2412_v34 = vmul.f32 %v2410_v32, %v2406_v29 }
0x16f8   :  { %v2415_v35 = vadd.f32 %v2413_v33, %v2403_v25  ;;  %v2414_v11 = vmul.f32 0.044715, %v2412_v34 }
0x16fa   :  { %v2417_v14 = vmul.f32 0.7978846, %v2415_v35  ;;  %v2416_v15 = vadd.f32 %v2414_v11, %v2406_v29 }
0x16fc   :  { %3389 = vtanh.f32 %v2417_v14  ;;  %v2418_v37 = vmul.f32 0.7978846, %v2416_v15 }
0x16fe   :  { %3391 = vtanh.f32 %v2418_v37 }
0x1706   :  { %v3390_v38 = vpop.eup %3389 }
0x1707   :  { %v2421_v39 = vadd.f32 1.0, %v3390_v38 }
0x1708   :  { %v3392_v40 = vpop.eup %3391 }
0x1709   :  { %v2423_v41 = vmul.f32 0.5, %v2421_v39  ;;  %v2422_v42 = vadd.f32 1.0, %v3392_v40 }
0x170b   :  { %v2424_v43 = vmul.f32 0.5, %v2422_v42  ;;  %v2425_v44 = vmul.f32 %v2423_v41, %v2403_v25 }
0x170d   :  { %v2426_v45 = vmul.f32 %v2424_v43, %v2406_v29 }
0x170f   :  { %v2436_v46 = vpack.c.bf16 %v2426_v45, %v2425_v44  ;;  %v3335_v45 = vld [vmem:[%s4113_s22] sm:$0xff]  }
0x1711   :  { %3271 = vmatmul.mubr.msk.bf16.vlgmr.msra.gmra.mrb[72].mxu0 %vm1254_vm5, %v2436_v46  ;;  %v3336_v46 = vld [vmem:[%s4113_s22 + $0x8] sm:$0xff]   ;;  %s2728_s22 = sshll.u32 %s3425_s9, 4  ;;  %s2729_s22 = int_to_ptr.vmem [resolvable:$true] %s2728_s22 }
0x1712   :  { %p3404_p1 = scmp.lt.s32.totalorder %s2729_s22, %s2729_s22 }
0x17e4   :  { %v2506_v49 = vpop.f32.mrb[72].mxu0 }
0x17e5   :  { %v2507_v52 = vadd.f32 %v2902_v48, %v2506_v49  ;;  %v3272_v53 = vpop.f32.mrb[73].mxu0 }
0x17e6   :  { %v2509_v54 = vpop.f32.mrb[74].mxu0 }
0x17e7   :  { %v2510_v55 = vadd.f32 %v2902_v48, %v2509_v54  ;;  %v3273_v5 = vpop.f32.mrb[75].mxu0  ;;  %v2513_v56 = vadd.f32 %v2507_v52, %v2337_v17  ;;  %v2910_v17 = vld [vmem:[%s4109_s18 + $0x1] ss:$0 sm:$0xff]  ;;  %v2912_v48 = vld [vmem:[%s4112_s21] ss:$0 sm:$0xff]  ;;  %s3399_s21 = scalar_lea.vmem %s2729_s22, 32 }
0x17e8   :  { %p3400_p0 = scmp.ne.s32.totalorder %s2729_s22, %s3399_s21  ;;  %p3405_p2 = scmp.lt.s32.totalorder %s3399_s21, %s3399_s21 }
0x17e9   :  { %v2519_v36 = vsel %vm83_vm0, %v2513_v56, 0.0  ;;  %v2514_v7 = vadd.f32 %v2510_v55, %v2338_v18 }
0x17ea   :  { %2520 = vadd.xlane.f32.xlu0 %v2519_v36  ;;  %p3406_p3 = por %p3405_p2, %p3404_p1 }
0x17eb   :  { %v2522_v57 = vsel %vm83_vm0, %v2514_v7, 0.0 }
0x17ec   :  { %2523 = vadd.xlane.f32.xlu1 %v2522_v57  ;;  %p3407_p4 = pnand %p3406_p3, %p3400_p0 }
0x1877   :  { %v2521_v58 = vpop.xlane.xlu0 %2520 }
0x1878   :  { %v2525_v59 = vmul.f32 0.03125, %v2521_v58 }
0x1879   :  { %v2524_v0 = vpop.xlane.xlu1 %2523 }
0x187a   :  { %v2527_v1 = vsub.f32 %v2513_v56, %v2525_v59  ;;  %v2526_v60 = vmul.f32 0.03125, %v2524_v0 }
0x187c   :  { %v2528_v61 = vsub.f32 %v2514_v7, %v2526_v60  ;;  %v2529_v62 = vmul.f32 %v2527_v1, %v2527_v1 }
0x187e   :  { %v2531_v63 = vsel %vm83_vm0, %v2529_v62, 0.0  ;;  %v2530_v2 = vmul.f32 %v2528_v61, %v2528_v61 }
0x187f   :  { %2532 = vadd.xlane.f32.xlu0 %v2531_v63 }
0x1880   :  { %v2534_v4 = vsel %vm83_vm0, %v2530_v2, 0.0 }
0x1881   :  { %2535 = vadd.xlane.f32.xlu1 %v2534_v4 }
0x190c   :  { %v2533_v47 = vpop.xlane.xlu0 %2532 }
0x190d   :  { %v2537_v50 = vmul.f32 0.03125, %v2533_v47 }
0x190e   :  { %v2536_v51 = vpop.xlane.xlu1 %2535 }
0x190f   :  { %v2539_v9 = vadd.f32 1e-05, %v2537_v50  ;;  %v2538_v10 = vmul.f32 0.03125, %v2536_v51 }
0x1911   :  { %3393 = vrsqrt.f32 %v2539_v9  ;;  %v2540_v12 = vadd.f32 1e-05, %v2538_v10 }
0x1913   :  { %3395 = vrsqrt.f32 %v2540_v12 }
0x191b   :  { %v3394_v13 = vpop.eup %3393 }
0x191c   :  { %v2543_v18 = vmul.f32 %v3394_v13, %v2527_v1 }
0x191d   :  { %v3396_v19 = vpop.eup %3395 }
0x191e   :  { %v2551_v21 = vmul.f32 %v2910_v17, %v2543_v18  ;;  %v2544_v3 = vmul.f32 %v3396_v19, %v2528_v61 }
0x1920   :  { %v2559_v22 = vadd.f32 %v2911_v20, %v2551_v21  ;;  %v2552_v23 = vmul.f32 %v2910_v17, %v2544_v3 }
0x1922   :  { %v2561_v24 = vsel %vm83_vm0, %v2559_v22, 0.0  ;;  %v2560_v25 = vadd.f32 %v2911_v20, %v2552_v23 }
0x1923   :  { %v2562_v26 = vrot.slane %v2561_v24, 4 }
0x1924   :  { %v2568_v27 = vsel %vm83_vm0, %v2560_v25, 0.0 }
0x1925   :  { %v2563_v28 = vadd.f32 %v2562_v26, %v2561_v24  ;;  %v2569_v29 = vrot.slane %v2568_v27, 4 }
0x1927   :  { %v2564_v30 = vrot.slane %v2563_v28, 2  ;;  %v2570_v31 = vadd.f32 %v2569_v29, %v2568_v27 }
0x1929   :  { %v2571_v32 = vrot.slane %v2570_v31, 2  ;;  %v2565_v33 = vadd.f32 %v2564_v30, %v2563_v28 }
0x192b   :  { %v2566_v34 = vrot.slane %v2565_v33, 1  ;;  %v2572_v35 = vadd.f32 %v2571_v32, %v2570_v31 }
0x192d   :  { %v2567_v11 = vadd.f32 %v2566_v34, %v2565_v33  ;;  %v2573_v14 = vrot.slane %v2572_v35, 1 }
0x192f   :  { %v2574_v15 = vadd.f32 %v2573_v14, %v2572_v35  ;;  %v2576_v37 = vmul.f32 0.125, %v2567_v11 }
0x1931   :  { %v2577_v38 = vmul.f32 0.125, %v2574_v15  ;;  %v2582_v39 = vpack.c.bf16 %v2576_v37, %v2576_v37 }
0x1933   :  { %v2583_v40 = vpack.c.bf16 %v2577_v38, %v2577_v38  ;;  %v2593_v41 = vunpack.c.l.b16 %v2582_v39 }
0x1935   :  { %v2594_v42 = vunpack.c.l.b16 %v2583_v40 }
0x1937   :  { %v2596_v43 = vsel %vm2595_vm6, %v2594_v42, %v2593_v41 }
0x1938   :  { %v2597_v44 = vpack.c.b16 %v2596_v43, %v2596_v43 }
0x193a   :  { %3279 = vmatmul.mubr.msk.bf16.vlgmr.msra.gmra.mrb[68].mxu1 %vm83_vm0, %v2597_v44 }
0x193b   :  { %3286 = vmatprep.mubr.msk.bf16.mxu1 %vm3424_vm1, %v3423_v16  ;;  %3283 = vmatpush3.bf16.msra.mxu1 %v3335_v45 }
0x193c   :  { %3284 = vmatprep.subr.bf16.mxu1 %v3423_v16  ;;  %v2916_v16 = vld [vmem:[%s4114_s23] ss:$0 sm:$0xff] }
0x193f   :  { %3285 = vmatpush3.bf16.msra.mxu1 %v3336_v46 }
0x1a0d   :  { %v2647_v49 = vpop.f32.mrb[68].mxu1 }
0x1a0e   :  { %v2648_v52 = vadd.f32 %v2912_v48, %v2647_v49  ;;  %v3280_v53 = vpop.f32.mrb[69].mxu1 }
0x1a0f   :  { %v2650_v54 = vpop.f32.mrb[70].mxu1 }
0x1a10   :  { %v2653_v55 = vmax.f32 %v2648_v52, 0.0  ;;  %v3281_v5 = vpop.f32.mrb[71].mxu1 }
0x1a12   :  { %v2658_v56 = vpack.c.bf16 %v2653_v55, %v2653_v55 }
0x1a14   :  { %3287 = vmatmul.mubr.msk.bf16.vlgmr.msra.gmra.mrb[72].mxu1 %vm83_vm0, %v2658_v56 }
0x1ae7   :  { %v2715_v36 = vpop.f32.mrb[72].mxu1 }
0x1ae8   :  { %v2716_v7 = vadd.f32 %v2916_v16, %v2715_v36  ;;  %v3288_v57 = vpop.f32.mrb[73].mxu1 }
0x1ae9   :  { %v2718_v58 = vpop.f32.mrb[74].mxu1 }
0x1aea   :  { %2721 = vst [vmem:[#allocation2] sm:$0x3] %v2716_v7  ;;  %v3289_v59 = vpop.f32.mrb[75].mxu1 }
0x1aeb   :  { %3410 = shalt.err (!%p3407_p4)
}
0x1aec   :  { %s3411_s23 = scalar_lea.hbm %s4115_s24, 32 }
0x1aed   :  { %p3412_p5 = scmp.ne.s32.totalorder %s4115_s24, %s3411_s23  ;;  %p3415_p6 = scmp.lt.u32.totalorder %s3411_s23, %s4115_s24 }
0x1aef   :  { %p3417_p7 = pnand %p3415_p6, %p3412_p5 }
0x1af1   :  { %3420 = shalt.err (!%p3417_p7)
}
0x1af2   :  { %2731 = dma.vmem_to_hbm [thread:$0]  %s2729_s22, 32, %s4115_s24, [#allocation3]  }
0x1af3   :  { %3421 = dma.done.wait [#allocation3], 32  }
0x1af4   :  { %3422 = vsyncadd [#allocation3], 4294967264 }
0x1af5   :  { %2735 = vsyncpa [#allocation3], 1 }

</bundles_post_ra>
